<compile_context>
chip_gen: v6e
topology: v6e:2x2x1
jax: 0.10.0
libtpu: 0.0.40
codegen_flags: <defaults>
</compile_context>

<pallas_src>
import functools

import jax
import jax.numpy as jnp
from jax import lax
from jax.experimental import pallas as pl
from jax.experimental.pallas import tpu as pltpu


def upsample_kernel(x_ref, w_ref, b_ref, o_ref, patch_ref, *, H, W):
    """One batch element: fused nearest-2x upsample + 3x3 conv (pad=1).

    x_ref:     (1, C, HW + 2W + 2) f32  flattened spatial row, zero-padded by
                                        W+1 on each side of the HW axis
    w_ref:     (4C, 9C) bf16            phase-combined weights,
                                        rows (a, q, c_out), cols (du, dv, c_in)
    b_ref:     (4C, 1)  f32             phase-tiled conv bias
    o_ref:     (1, 4C, HW) bf16         output slab, rows (a, q, c_out)
    patch_ref: (9C, HW) bf16            VMEM scratch: transposed im2col patch
    """
    C = x_ref.shape[1]
    HW = H * W

    xp = x_ref[0]                                       # (C, HW + 2W + 2)

    # Column-wrap masks.  Row (+/-W) shifts fall into the zero padding of the
    # flattened axis automatically; only the +/-1 column shifts can read the
    # neighbouring row's data and must be masked at j == 0 / j == W-1.
    lane = lax.broadcasted_iota(jnp.int32, (1, HW), 1)
    col = lane % W
    ok_left = col >= 1                                  # valid lanes, dv = -1
    ok_right = col <= W - 2                             # valid lanes, dv = +1

    k = 0
    for du in (-1, 0, 1):
        for dv in (-1, 0, 1):
            off = (du + 1) * W + (dv + 1)               # static lane offset
            v = lax.slice_in_dim(xp, off, off + HW, axis=1)   # (C, HW)
            if dv == -1:
                v = jnp.where(ok_left, v, 0.0)
            elif dv == 1:
                v = jnp.where(ok_right, v, 0.0)
            # C is a multiple of 8 -> aligned, unmasked sublane-offset store.
            patch_ref[k * C:(k + 1) * C, :] = v.astype(jnp.bfloat16)
            k += 1

    # Single MXU matmul: all 9 taps x all 4 output phases at once (K = 9C).
    res = jnp.dot(w_ref[...], patch_ref[...],
                  preferred_element_type=jnp.float32)   # (4C, HW) f32
    res = res + b_ref[...]
    o_ref[0] = res.astype(o_ref.dtype)                  # lane-dense bf16 store


def _combine_weights(w_oihw):
    """Fold the nearest-2x upsample into the 3x3 conv weights.

    Returns (4*C_out, 9*C_in): rows ordered (row_phase a, col_phase q, c_out),
    cols ordered (du, dv, c_in) over the 3x3 neighbourhood of the ORIGINAL
    (pre-upsample) grid (offsets -1, 0, +1).
    """
    cout, cin, _, _ = w_oihw.shape
    w_f = w_oihw.astype(jnp.float32)                     # (o, i, kh, kw)
    # S[phase, d, k] == 1 iff kernel tap k of that output phase reads
    # original-grid offset d (index 0 -> -1, 1 -> 0, 2 -> +1).
    S = jnp.array([[[1., 0., 0.], [0., 1., 1.], [0., 0., 0.]],   # phase 0
                   [[0., 0., 0.], [1., 1., 0.], [0., 0., 1.]]],  # phase 1
                  jnp.float32)
    wc = jnp.einsum("auh,qvw,oihw->aqouvi", S, S, w_f)   # (2,2,O,3,3,I)
    return wc.reshape(4 * cout, 9 * cin)


@jax.jit
def upsample(x_nchw, w_oihw, bias):
    """x: (B, C, H, W), w: (C, C, 3, 3) OIHW, bias: (C,) -> (B, C, 2H, 2W)."""
    B, C, H, W = x_nchw.shape
    assert w_oihw.shape == (C, C, 3, 3) and bias.shape == (C,)
    HW = H * W
    P = W + 1                      # one-row + one-col halo on the flat axis
    HWP = HW + 2 * P

    # NCHW-native: flatten spatial dims (free contiguous reshape) and zero-pad
    # the flattened axis once so every tap's +/-W, +/-1 shift stays in bounds.
    x_flat = jnp.pad(x_nchw.reshape(B, C, HW), ((0, 0), (0, 0), (P, P)))

    w_all = _combine_weights(w_oihw).astype(jnp.bfloat16)           # (4C, 9C)
    b_all = jnp.tile(bias.astype(jnp.float32), 4).reshape(4 * C, 1)

    kernel = functools.partial(upsample_kernel, H=H, W=W)
    out = pl.pallas_call(
        kernel,
        out_shape=jax.ShapeDtypeStruct((B, 4 * C, HW), jnp.bfloat16),
        grid=(B,),
        in_specs=[
            pl.BlockSpec((1, C, HWP), lambda i: (i, 0, 0)),
            pl.BlockSpec((4 * C, 9 * C), lambda i: (0, 0)),   # resident weights
            pl.BlockSpec((4 * C, 1), lambda i: (0, 0)),       # resident bias
        ],
        out_specs=pl.BlockSpec((1, 4 * C, HW), lambda i: (i, 0, 0)),
        scratch_shapes=[pltpu.VMEM((9 * C, HW), jnp.bfloat16)],
        compiler_params=pltpu.CompilerParams(dimension_semantics=("parallel",)),
    )(x_flat, w_all, b_all)

    # De-interleave the 4 sub-pixel phases (on the bf16 slab) and go to NCHW:
    # (B, (a,q,c), HW) -> (B, a, q, C, H, W) -> (B, C, H, a, W, q) -> (B, C, 2H, 2W)
    out = out.reshape(B, 2, 2, C, H, W)
    out = jnp.transpose(out, (0, 3, 4, 1, 5, 2))
    return out.reshape(B, C, 2 * H, 2 * W).astype(x_nchw.dtype)


# ---------------- pure-JAX reference (for the correctness check) ----------------
def upsample_ref(x_nchw, w_oihw, bias):
    up = jnp.repeat(jnp.repeat(x_nchw, 2, axis=2), 2, axis=3)    # nearest 2x
    y = lax.conv_general_dilated(
        up, w_oihw, window_strides=(1, 1), padding=((1, 1), (1, 1)),
        dimension_numbers=("NCHW", "OIHW", "NCHW"),
        precision=lax.Precision.HIGHEST)
    return y + bias.reshape(1, -1, 1, 1)


if __name__ == "__main__":
    B, C, H, W = 2, 32, 16, 16        # 4*C == 128 rows, H*W == 256 lanes

    key = jax.random.PRNGKey(0)
    kx, kw, kb = jax.random.split(key, 3)
    x = jax.random.normal(kx, (B, C, H, W), jnp.float32)
    w = 0.1 * jax.random.normal(kw, (C, C, 3, 3), jnp.float32)   # PyTorch OIHW
    b = 0.1 * jax.random.normal(kb, (C,), jnp.float32)

    out = jax.block_until_ready(upsample(x, w, b))
    ref = jax.block_until_ready(upsample_ref(x, w, b))

    assert out.shape == (B, C, 2 * H, 2 * W), out.shape
    err = float(jnp.max(jnp.abs(out - ref)))
    # Kernel uses bf16 MXU operands and a bf16 output slab (f32 accumulation)
    # vs. an all-f32 reference, so allow bf16-level tolerance; real bugs would
    # produce O(1) errors.
    assert err < 1.5e-1, f"mismatch vs reference: max abs err = {err}"
    print("KERNEL_OK")
</pallas_src>

<mosaic_0001>
module attributes {stable_mosaic.version = 11 : i64} {
  func.func @upsample_kernel(%arg0: i32, %arg1: memref<1x32x290xf32, #tpu.memory_space<vmem>>, %arg2: memref<128x288xbf16, #tpu.memory_space<vmem>>, %arg3: memref<128x1xf32, #tpu.memory_space<vmem>>, %arg4: memref<1x128x256xbf16, #tpu.memory_space<vmem>>, %arg5: memref<288x256xbf16, #tpu.memory_space<vmem>>) attributes {dimension_semantics = [#tpu.dimension_semantics<parallel>], iteration_bounds = array<i64: 2>, scalar_prefetch = 0 : i64, scratch_operands = 1 : i64, tpu.core_type = #tpu.core_type<tc>, window_params = [{transform_indices = @transform_0, window_bounds = array<i64: 1, 32, 290>}, {pipeline_mode = #tpu.pipeline_mode<synchronous>, transform_indices = @transform_1, window_bounds = array<i64: 128, 288>}, {pipeline_mode = #tpu.pipeline_mode<synchronous>, transform_indices = @transform_2, window_bounds = array<i64: 128, 1>}, {transform_indices = @transform_3, window_bounds = array<i64: 1, 128, 256>}]} {
    %c0 = arith.constant 0 : index
    %c0_0 = arith.constant 0 : index
    %c0_1 = arith.constant 0 : index
    %0 = vector.load %arg1[%c0, %c0_0, %c0_1] : memref<1x32x290xf32, #tpu.memory_space<vmem>>, vector<1x32x290xf32>
    %1 = vector.shape_cast %0 : vector<1x32x290xf32> to vector<32x290xf32>
    %2 = tpu.iota {dimensions = array<i32: 1>} : vector<1x256xi32>
    %c16_i32 = arith.constant 16 : i32
    %c0_i32 = arith.constant 0 : i32
    %3 = arith.cmpi eq, %c16_i32, %c0_i32 : i32
    %c1_i32 = arith.constant 1 : i32
    %4 = arith.select %3, %c1_i32, %c16_i32 : i32
    %5 = vector.broadcast %4 : i32 to vector<1x256xi32>
    %6 = arith.remsi %2, %5 : vector<1x256xi32>
    %c0_i32_2 = arith.constant 0 : i32
    %7 = vector.broadcast %c0_i32_2 : i32 to vector<1x256xi32>
    %8 = arith.cmpi ne, %6, %7 : vector<1x256xi32>
    %c0_i32_3 = arith.constant 0 : i32
    %9 = vector.broadcast %c0_i32_3 : i32 to vector<1x256xi32>
    %10 = arith.cmpi slt, %6, %9 : vector<1x256xi32>
    %c0_i32_4 = arith.constant 0 : i32
    %11 = arith.cmpi slt, %4, %c0_i32_4 : i32
    %12 = vector.broadcast %11 : i1 to vector<1x256xi1>
    %13 = vector.broadcast %12 : vector<1x256xi1> to vector<1x256xi1>
    %14 = arith.xori %10, %13 : vector<1x256xi1>
    %15 = arith.andi %14, %8 : vector<1x256xi1>
    %16 = vector.broadcast %4 : i32 to vector<1x256xi32>
    %17 = arith.addi %6, %16 : vector<1x256xi32>
    %18 = arith.select %15, %17, %6 : vector<1x256xi1>, vector<1x256xi32>
    %c1_i32_5 = arith.constant 1 : i32
    %19 = vector.broadcast %c1_i32_5 : i32 to vector<1x256xi32>
    %20 = arith.cmpi sge, %18, %19 : vector<1x256xi32>
    %c14_i32 = arith.constant 14 : i32
    %21 = vector.broadcast %c14_i32 : i32 to vector<1x256xi32>
    %22 = arith.cmpi sle, %18, %21 : vector<1x256xi32>
    %23 = vector.extract_strided_slice %1 {offsets = [0, 0], sizes = [32, 256], strides = [1, 1]} : vector<32x290xf32> to vector<32x256xf32>
    %cst = arith.constant 0.000000e+00 : f32
    %24 = vector.shape_cast %20 : vector<1x256xi1> to vector<1x256xi1>
    %25 = vector.broadcast %24 : vector<1x256xi1> to vector<32x256xi1>
    %26 = vector.broadcast %cst : f32 to vector<32x256xf32>
    %27 = arith.select %25, %23, %26 : vector<32x256xi1>, vector<32x256xf32>
    %28 = arith.truncf %27 : vector<32x256xf32> to vector<32x256xbf16>
    %c0_6 = arith.constant 0 : index
    %c0_7 = arith.constant 0 : index
    %29 = vector.load %arg5[%c0_6, %c0_7] : memref<288x256xbf16, #tpu.memory_space<vmem>>, vector<32x256xbf16>
    tpu.vector_store %arg5[%c0_6, %c0_7], %28 {strides = array<i32>} : memref<288x256xbf16, #tpu.memory_space<vmem>>, vector<32x256xbf16>,
    %30 = vector.extract_strided_slice %1 {offsets = [0, 1], sizes = [32, 256], strides = [1, 1]} : vector<32x290xf32> to vector<32x256xf32>
    %31 = arith.truncf %30 : vector<32x256xf32> to vector<32x256xbf16>
    %c32 = arith.constant 32 : index
    %c0_8 = arith.constant 0 : index
    %32 = vector.load %arg5[%c32, %c0_8] : memref<288x256xbf16, #tpu.memory_space<vmem>>, vector<32x256xbf16>
    tpu.vector_store %arg5[%c32, %c0_8], %31 {strides = array<i32>} : memref<288x256xbf16, #tpu.memory_space<vmem>>, vector<32x256xbf16>,
    %33 = vector.extract_strided_slice %1 {offsets = [0, 2], sizes = [32, 256], strides = [1, 1]} : vector<32x290xf32> to vector<32x256xf32>
    %cst_9 = arith.constant 0.000000e+00 : f32
    %34 = vector.shape_cast %22 : vector<1x256xi1> to vector<1x256xi1>
    %35 = vector.broadcast %34 : vector<1x256xi1> to vector<32x256xi1>
    %36 = vector.broadcast %cst_9 : f32 to vector<32x256xf32>
    %37 = arith.select %35, %33, %36 : vector<32x256xi1>, vector<32x256xf32>
    %38 = arith.truncf %37 : vector<32x256xf32> to vector<32x256xbf16>
    %c64 = arith.constant 64 : index
    %c0_10 = arith.constant 0 : index
    %39 = vector.load %arg5[%c64, %c0_10] : memref<288x256xbf16, #tpu.memory_space<vmem>>, vector<32x256xbf16>
    tpu.vector_store %arg5[%c64, %c0_10], %38 {strides = array<i32>} : memref<288x256xbf16, #tpu.memory_space<vmem>>, vector<32x256xbf16>,
    %40 = vector.extract_strided_slice %1 {offsets = [0, 16], sizes = [32, 256], strides = [1, 1]} : vector<32x290xf32> to vector<32x256xf32>
    %cst_11 = arith.constant 0.000000e+00 : f32
    %41 = vector.shape_cast %20 : vector<1x256xi1> to vector<1x256xi1>
    %42 = vector.broadcast %41 : vector<1x256xi1> to vector<32x256xi1>
    %43 = vector.broadcast %cst_11 : f32 to vector<32x256xf32>
    %44 = arith.select %42, %40, %43 : vector<32x256xi1>, vector<32x256xf32>
    %45 = arith.truncf %44 : vector<32x256xf32> to vector<32x256xbf16>
    %c96 = arith.constant 96 : index
    %c0_12 = arith.constant 0 : index
    %46 = vector.load %arg5[%c96, %c0_12] : memref<288x256xbf16, #tpu.memory_space<vmem>>, vector<32x256xbf16>
    tpu.vector_store %arg5[%c96, %c0_12], %45 {strides = array<i32>} : memref<288x256xbf16, #tpu.memory_space<vmem>>, vector<32x256xbf16>,
    %47 = vector.extract_strided_slice %1 {offsets = [0, 17], sizes = [32, 256], strides = [1, 1]} : vector<32x290xf32> to vector<32x256xf32>
    %48 = arith.truncf %47 : vector<32x256xf32> to vector<32x256xbf16>
    %c128 = arith.constant 128 : index
    %c0_13 = arith.constant 0 : index
    %49 = vector.load %arg5[%c128, %c0_13] : memref<288x256xbf16, #tpu.memory_space<vmem>>, vector<32x256xbf16>
    tpu.vector_store %arg5[%c128, %c0_13], %48 {strides = array<i32>} : memref<288x256xbf16, #tpu.memory_space<vmem>>, vector<32x256xbf16>,
    %50 = vector.extract_strided_slice %1 {offsets = [0, 18], sizes = [32, 256], strides = [1, 1]} : vector<32x290xf32> to vector<32x256xf32>
    %cst_14 = arith.constant 0.000000e+00 : f32
    %51 = vector.shape_cast %22 : vector<1x256xi1> to vector<1x256xi1>
    %52 = vector.broadcast %51 : vector<1x256xi1> to vector<32x256xi1>
    %53 = vector.broadcast %cst_14 : f32 to vector<32x256xf32>
    %54 = arith.select %52, %50, %53 : vector<32x256xi1>, vector<32x256xf32>
    %55 = arith.truncf %54 : vector<32x256xf32> to vector<32x256xbf16>
    %c160 = arith.constant 160 : index
    %c0_15 = arith.constant 0 : index
    %56 = vector.load %arg5[%c160, %c0_15] : memref<288x256xbf16, #tpu.memory_space<vmem>>, vector<32x256xbf16>
    tpu.vector_store %arg5[%c160, %c0_15], %55 {strides = array<i32>} : memref<288x256xbf16, #tpu.memory_space<vmem>>, vector<32x256xbf16>,
    %57 = vector.extract_strided_slice %1 {offsets = [0, 32], sizes = [32, 256], strides = [1, 1]} : vector<32x290xf32> to vector<32x256xf32>
    %cst_16 = arith.constant 0.000000e+00 : f32
    %58 = vector.shape_cast %20 : vector<1x256xi1> to vector<1x256xi1>
    %59 = vector.broadcast %58 : vector<1x256xi1> to vector<32x256xi1>
    %60 = vector.broadcast %cst_16 : f32 to vector<32x256xf32>
    %61 = arith.select %59, %57, %60 : vector<32x256xi1>, vector<32x256xf32>
    %62 = arith.truncf %61 : vector<32x256xf32> to vector<32x256xbf16>
    %c192 = arith.constant 192 : index
    %c0_17 = arith.constant 0 : index
    %63 = vector.load %arg5[%c192, %c0_17] : memref<288x256xbf16, #tpu.memory_space<vmem>>, vector<32x256xbf16>
    tpu.vector_store %arg5[%c192, %c0_17], %62 {strides = array<i32>} : memref<288x256xbf16, #tpu.memory_space<vmem>>, vector<32x256xbf16>,
    %64 = vector.extract_strided_slice %1 {offsets = [0, 33], sizes = [32, 256], strides = [1, 1]} : vector<32x290xf32> to vector<32x256xf32>
    %65 = arith.truncf %64 : vector<32x256xf32> to vector<32x256xbf16>
    %c224 = arith.constant 224 : index
    %c0_18 = arith.constant 0 : index
    %66 = vector.load %arg5[%c224, %c0_18] : memref<288x256xbf16, #tpu.memory_space<vmem>>, vector<32x256xbf16>
    tpu.vector_store %arg5[%c224, %c0_18], %65 {strides = array<i32>} : memref<288x256xbf16, #tpu.memory_space<vmem>>, vector<32x256xbf16>,
    %67 = vector.extract_strided_slice %1 {offsets = [0, 34], sizes = [32, 256], strides = [1, 1]} : vector<32x290xf32> to vector<32x256xf32>
    %cst_19 = arith.constant 0.000000e+00 : f32
    %68 = vector.shape_cast %22 : vector<1x256xi1> to vector<1x256xi1>
    %69 = vector.broadcast %68 : vector<1x256xi1> to vector<32x256xi1>
    %70 = vector.broadcast %cst_19 : f32 to vector<32x256xf32>
    %71 = arith.select %69, %67, %70 : vector<32x256xi1>, vector<32x256xf32>
    %72 = arith.truncf %71 : vector<32x256xf32> to vector<32x256xbf16>
    %c256 = arith.constant 256 : index
    %c0_20 = arith.constant 0 : index
    %73 = vector.load %arg5[%c256, %c0_20] : memref<288x256xbf16, #tpu.memory_space<vmem>>, vector<32x256xbf16>
    tpu.vector_store %arg5[%c256, %c0_20], %72 {strides = array<i32>} : memref<288x256xbf16, #tpu.memory_space<vmem>>, vector<32x256xbf16>,
    %c0_21 = arith.constant 0 : index
    %c0_22 = arith.constant 0 : index
    %74 = vector.load %arg2[%c0_21, %c0_22] : memref<128x288xbf16, #tpu.memory_space<vmem>>, vector<128x288xbf16>
    %c0_23 = arith.constant 0 : index
    %c0_24 = arith.constant 0 : index
    %75 = vector.load %arg5[%c0_23, %c0_24] : memref<288x256xbf16, #tpu.memory_space<vmem>>, vector<288x256xbf16>
    %cst_25 = arith.constant dense<0.000000e+00> : vector<128x256xf32>
    %76 = tpu.matmul %74, %75, %cst_25 {dimension_numbers = #tpu.dot_dimension_numbers<[1], [0], [0], [1], [0, 0, 1, 1], [], []>} : vector<128x288xbf16>, vector<288x256xbf16>, vector<128x256xf32> -> vector<128x256xf32>
    %c0_26 = arith.constant 0 : index
    %c0_27 = arith.constant 0 : index
    %77 = vector.load %arg3[%c0_26, %c0_27] : memref<128x1xf32, #tpu.memory_space<vmem>>, vector<128x1xf32>
    %78 = vector.broadcast %77 : vector<128x1xf32> to vector<128x256xf32>
    %79 = arith.addf %76, %78 : vector<128x256xf32>
    %80 = arith.truncf %79 : vector<128x256xf32> to vector<128x256xbf16>
    %c0_28 = arith.constant 0 : index
    %c0_29 = arith.constant 0 : index
    %c0_30 = arith.constant 0 : index
    %81 = vector.load %arg4[%c0_28, %c0_29, %c0_30] : memref<1x128x256xbf16, #tpu.memory_space<vmem>>, vector<1x128x256xbf16>
    %82 = vector.shape_cast %81 : vector<1x128x256xbf16> to vector<128x256xbf16>
    %83 = vector.shape_cast %80 : vector<128x256xbf16> to vector<1x128x256xbf16>
    tpu.vector_store %arg4[%c0_28, %c0_29, %c0_30], %83 {strides = array<i32>} : memref<1x128x256xbf16, #tpu.memory_space<vmem>>, vector<1x128x256xbf16>,
    return
  }
  func.func @transform_0(%arg0: i32) -> (i32, i32, i32) {
    %c0_i32 = arith.constant 0 : i32
    %c0_i32_0 = arith.constant 0 : i32
    %c0_i32_1 = arith.constant 0 : i32
    return %arg0, %c0_i32, %c0_i32_0 : i32, i32, i32
  }
  func.func @transform_1(%arg0: i32) -> (i32, i32) {
    %c0_i32 = arith.constant 0 : i32
    %c0_i32_0 = arith.constant 0 : i32
    %c0_i32_1 = arith.constant 0 : i32
    return %c0_i32, %c0_i32_0 : i32, i32
  }
  func.func @transform_2(%arg0: i32) -> (i32, i32) {
    %c0_i32 = arith.constant 0 : i32
    %c0_i32_0 = arith.constant 0 : i32
    %c0_i32_1 = arith.constant 0 : i32
    return %c0_i32, %c0_i32_0 : i32, i32
  }
  func.func @transform_3(%arg0: i32) -> (i32, i32, i32) {
    %c0_i32 = arith.constant 0 : i32
    %c0_i32_0 = arith.constant 0 : i32
    %c0_i32_1 = arith.constant 0 : i32
    return %arg0, %c0_i32, %c0_i32_0 : i32, i32, i32
  }
}

</mosaic_0001>

<bundles_post_ra>
// kernel: tile.0
= control target key start
LH: loop header
LB: loop body
LE: loop exit
PB: predicated region body
PF: predicated region fallthrough
CT: control target
= control target key end

     0   :  { %s547_s8 = smov 125   ;;  %s548_s9 = smov 126   ;;  %vm8_vm0 = vcmask 7168   ;;  %s1102_s0 = inlined_call_operand.vmem [shape: f32[4,32], index: 0, kind: input, shape index: {}]   ;;  %s1103_s1 = inlined_call_operand.vmem [shape: f32[128,1], index: 1, kind: output, shape index: {}]  }
   0x1   :  { %v5_v0 = vld [vmem:[%s1102_s0] sm:$0xf]  ;;  %s546_s0 = smov 127   ;;  %s549_s10 = smov 124  }
   0x2   :  { %6 = vst [vmem:[#allocation0] sm:$0xf] %v5_v0  ;;  %s550_s11 = smov 123   ;;  %s551_s12 = smov 122  }
   0x3   :  { %s552_s13 = smov 121   ;;  %s553_s14 = smov 120  }
   0x4   :  { %s554_s15 = smov 119   ;;  %s555_s16 = smov 118  }
   0x5   :  { %s556_s17 = smov 117   ;;  %s557_s18 = smov 116  }
   0x6   :  { %s558_s19 = smov 115   ;;  %s559_s20 = smov 114  }
   0x7   :  { %s560_s21 = smov 113   ;;  %s561_s22 = smov 112  }
   0x8   :  { %s562_s23 = smov 111   ;;  %s563_s24 = smov 110  }
   0x9   :  { %v16_v1 = vld [vmem:[#allocation0] sm:$0xf]   ;;  %s564_s25 = smov 109   ;;  %s565_s26 = smov 108  }
   0xa   :  { %v40_v2 = vld [vmem:[#allocation0] sm:$0xf]   ;;  %17 = vrot.lane.b32.xlu0 %v16_v1, %s546_s0  ;;  %s566_s27 = smov 107   ;;  %s567_s28 = smov 106  }
   0xb   :  { %41 = vrot.lane.b32.xlu1 %v40_v2, %s547_s8  ;;  %v28_v3 = vld [vmem:[#allocation0] sm:$0xf]   ;;  %s568_s29 = smov 105   ;;  %s569_s30 = smov 104  }
   0xc   :  { %v52_v4 = vld [vmem:[#allocation0] sm:$0xf]  }
   0xd   :  { %v64_v5 = vld [vmem:[#allocation0] sm:$0xf]  }
   0xe   :  { %29 = vrot.lane.b32.xlu0 %v28_v3, %s548_s9  ;;  %v76_v6 = vld [vmem:[#allocation0] sm:$0xf]   ;;  %s570_s9 = smov 103  }
   0xf   :  { %53 = vrot.lane.b32.xlu1 %v52_v4, %s549_s10  ;;  %v88_v7 = vld [vmem:[#allocation0] sm:$0xf]   ;;  %s571_s10 = smov 102  }
  0x10   :  { %v100_v8 = vld [vmem:[#allocation0] sm:$0xf]  }
  0x11   :  { %v112_v9 = vld [vmem:[#allocation0] sm:$0xf]  }
  0x12   :  { %65 = vrot.lane.b32.xlu0 %v64_v5, %s550_s11  ;;  %v124_v10 = vld [vmem:[#allocation0] sm:$0xf]   ;;  %s572_s11 = smov 101  }
  0x13   :  { %77 = vrot.lane.b32.xlu1 %v76_v6, %s551_s12  ;;  %v136_v11 = vld [vmem:[#allocation0] sm:$0xf]   ;;  %s573_s12 = smov 100  }
  0x14   :  { %v148_v12 = vld [vmem:[#allocation0] sm:$0xf]  }
  0x15   :  { %v160_v13 = vld [vmem:[#allocation0] sm:$0xf]  }
  0x16   :  { %89 = vrot.lane.b32.xlu0 %v88_v7, %s552_s13  ;;  %v172_v14 = vld [vmem:[#allocation0] sm:$0xf]   ;;  %s574_s13 = smov 99  }
  0x17   :  { %101 = vrot.lane.b32.xlu1 %v100_v8, %s553_s14  ;;  %v184_v15 = vld [vmem:[#allocation0] sm:$0xf]   ;;  %s575_s14 = smov 98  }
  0x18   :  { %v196_v16 = vld [vmem:[#allocation0] sm:$0xf]  }
  0x19   :  { %v208_v17 = vld [vmem:[#allocation0] sm:$0xf]  }
  0x1a   :  { %113 = vrot.lane.b32.xlu0 %v112_v9, %s554_s15  ;;  %v220_v18 = vld [vmem:[#allocation0] sm:$0xf]   ;;  %s576_s15 = smov 97  }
  0x1b   :  { %125 = vrot.lane.b32.xlu1 %v124_v10, %s555_s16  ;;  %v232_v19 = vld [vmem:[#allocation0] sm:$0xf]  }
  0x1c   :  { %v244_v20 = vld [vmem:[#allocation0] sm:$0xf]  }
  0x1d   :  { %v256_v21 = vld [vmem:[#allocation0] sm:$0xf]  }
  0x1e   :  { %137 = vrot.lane.b32.xlu0 %v136_v11, %s556_s17  ;;  %v268_v22 = vld [vmem:[#allocation0] sm:$0xf]  }
  0x1f   :  { %149 = vrot.lane.b32.xlu1 %v148_v12, %s557_s18  ;;  %v280_v23 = vld [vmem:[#allocation0] sm:$0xf]  }
  0x20   :  { %v292_v24 = vld [vmem:[#allocation0] sm:$0xf]  }
  0x21   :  { %v304_v25 = vld [vmem:[#allocation0] sm:$0xf]  }
  0x22   :  { %161 = vrot.lane.b32.xlu0 %v160_v13, %s558_s19  ;;  %v316_v26 = vld [vmem:[#allocation0] sm:$0xf]  }
  0x23   :  { %173 = vrot.lane.b32.xlu1 %v172_v14, %s559_s20  ;;  %v7_v27 = vld [vmem:[#allocation0] sm:$0xf]  }
  0x24   :  { %9 = vst.msk [vmem:[%s1103_s1] sm:$0x1] %vm8_vm0, %v7_v27   ;;  %388 = vst.msk [vmem:[%s1103_s1 + $0x1f] sm:$0x2] %vm8_vm0, %v7_v27   ;;  %v328_v28 = vld [vmem:[#allocation0] sm:$0xf]  }
  0x25   :  { %389 = vst.msk [vmem:[%s1103_s1 + $0x3e] sm:$0x4] %vm8_vm0, %v7_v27   ;;  %390 = vst.msk [vmem:[%s1103_s1 + $0x5d] sm:$0x8] %vm8_vm0, %v7_v27   ;;  %v340_v29 = vld [vmem:[#allocation0] sm:$0xf]  }
  0x26   :  { %185 = vrot.lane.b32.xlu0 %v184_v15, %s560_s21  ;;  %v352_v30 = vld [vmem:[#allocation0] sm:$0xf]  }
  0x27   :  { %197 = vrot.lane.b32.xlu1 %v196_v16, %s561_s22  ;;  %v364_v31 = vld [vmem:[#allocation0] sm:$0xf]  }
  0x28   :  { %v376_v32 = vld [vmem:[#allocation0] sm:$0xf]  }
  0x2a   :  { %209 = vrot.lane.b32.xlu0 %v208_v17, %s562_s23 }
  0x2b   :  { %221 = vrot.lane.b32.xlu1 %v220_v18, %s563_s24 }
  0x2e   :  { %233 = vrot.lane.b32.xlu0 %v232_v19, %s564_s25 }
  0x2f   :  { %245 = vrot.lane.b32.xlu1 %v244_v20, %s565_s26 }
  0x32   :  { %257 = vrot.lane.b32.xlu0 %v256_v21, %s566_s27 }
  0x33   :  { %269 = vrot.lane.b32.xlu1 %v268_v22, %s567_s28 }
  0x36   :  { %281 = vrot.lane.b32.xlu0 %v280_v23, %s568_s29 }
  0x37   :  { %293 = vrot.lane.b32.xlu1 %v292_v24, %s569_s30 }
  0x3a   :  { %305 = vrot.lane.b32.xlu0 %v304_v25, %s570_s9 }
  0x3b   :  { %317 = vrot.lane.b32.xlu1 %v316_v26, %s571_s10 }
  0x3e   :  { %329 = vrot.lane.b32.xlu0 %v328_v28, %s572_s11 }
  0x3f   :  { %341 = vrot.lane.b32.xlu1 %v340_v29, %s573_s12 }
  0x42   :  { %353 = vrot.lane.b32.xlu0 %v352_v30, %s574_s13 }
  0x43   :  { %365 = vrot.lane.b32.xlu1 %v364_v31, %s575_s14 }
  0x46   :  { %377 = vrot.lane.b32.xlu0 %v376_v32, %s576_s15 }
  0x7c   :  { %v18_v33 = vpop.permute.xlu0 %17  }
  0x7d   :  { %v42_v34 = vpop.permute.xlu1 %41   ;;  %391 = vst.msk [vmem:[%s1103_s1 + $0x1] sm:$0x1] %vm8_vm0, %v18_v33   ;;  %392 = vst.msk [vmem:[%s1103_s1 + $0x20] sm:$0x2] %vm8_vm0, %v18_v33  }
  0x7e   :  { %393 = vst.msk [vmem:[%s1103_s1 + $0x3f] sm:$0x4] %vm8_vm0, %v18_v33   ;;  %394 = vst.msk [vmem:[%s1103_s1 + $0x5e] sm:$0x8] %vm8_vm0, %v18_v33  }
  0x7f   :  { %399 = vst.msk [vmem:[%s1103_s1 + $0x3] sm:$0x1] %vm8_vm0, %v42_v34   ;;  %400 = vst.msk [vmem:[%s1103_s1 + $0x22] sm:$0x2] %vm8_vm0, %v42_v34  }
  0x80   :  { %401 = vst.msk [vmem:[%s1103_s1 + $0x41] sm:$0x4] %vm8_vm0, %v42_v34   ;;  %402 = vst.msk [vmem:[%s1103_s1 + $0x60] sm:$0x8] %vm8_vm0, %v42_v34   ;;  %v30_v35 = vpop.permute.xlu0 %29  }
  0x81   :  { %v54_v36 = vpop.permute.xlu1 %53   ;;  %395 = vst.msk [vmem:[%s1103_s1 + $0x2] sm:$0x1] %vm8_vm0, %v30_v35   ;;  %396 = vst.msk [vmem:[%s1103_s1 + $0x21] sm:$0x2] %vm8_vm0, %v30_v35  }
  0x82   :  { %397 = vst.msk [vmem:[%s1103_s1 + $0x40] sm:$0x4] %vm8_vm0, %v30_v35   ;;  %398 = vst.msk [vmem:[%s1103_s1 + $0x5f] sm:$0x8] %vm8_vm0, %v30_v35  }
  0x83   :  { %403 = vst.msk [vmem:[%s1103_s1 + $0x4] sm:$0x1] %vm8_vm0, %v54_v36   ;;  %404 = vst.msk [vmem:[%s1103_s1 + $0x23] sm:$0x2] %vm8_vm0, %v54_v36  }
  0x84   :  { %405 = vst.msk [vmem:[%s1103_s1 + $0x42] sm:$0x4] %vm8_vm0, %v54_v36   ;;  %406 = vst.msk [vmem:[%s1103_s1 + $0x61] sm:$0x8] %vm8_vm0, %v54_v36   ;;  %v66_v37 = vpop.permute.xlu0 %65  }
  0x85   :  { %v78_v38 = vpop.permute.xlu1 %77   ;;  %407 = vst.msk [vmem:[%s1103_s1 + $0x5] sm:$0x1] %vm8_vm0, %v66_v37   ;;  %408 = vst.msk [vmem:[%s1103_s1 + $0x24] sm:$0x2] %vm8_vm0, %v66_v37  }
  0x86   :  { %409 = vst.msk [vmem:[%s1103_s1 + $0x43] sm:$0x4] %vm8_vm0, %v66_v37   ;;  %410 = vst.msk [vmem:[%s1103_s1 + $0x62] sm:$0x8] %vm8_vm0, %v66_v37  }
  0x87   :  { %411 = vst.msk [vmem:[%s1103_s1 + $0x6] sm:$0x1] %vm8_vm0, %v78_v38   ;;  %412 = vst.msk [vmem:[%s1103_s1 + $0x25] sm:$0x2] %vm8_vm0, %v78_v38  }
  0x88   :  { %413 = vst.msk [vmem:[%s1103_s1 + $0x44] sm:$0x4] %vm8_vm0, %v78_v38   ;;  %414 = vst.msk [vmem:[%s1103_s1 + $0x63] sm:$0x8] %vm8_vm0, %v78_v38   ;;  %v90_v39 = vpop.permute.xlu0 %89  }
  0x89   :  { %v102_v40 = vpop.permute.xlu1 %101   ;;  %415 = vst.msk [vmem:[%s1103_s1 + $0x7] sm:$0x1] %vm8_vm0, %v90_v39   ;;  %416 = vst.msk [vmem:[%s1103_s1 + $0x26] sm:$0x2] %vm8_vm0, %v90_v39  }
  0x8a   :  { %417 = vst.msk [vmem:[%s1103_s1 + $0x45] sm:$0x4] %vm8_vm0, %v90_v39   ;;  %418 = vst.msk [vmem:[%s1103_s1 + $0x64] sm:$0x8] %vm8_vm0, %v90_v39  }
  0x8b   :  { %419 = vst.msk [vmem:[%s1103_s1 + $0x8] sm:$0x1] %vm8_vm0, %v102_v40   ;;  %420 = vst.msk [vmem:[%s1103_s1 + $0x27] sm:$0x2] %vm8_vm0, %v102_v40  }
  0x8c   :  { %421 = vst.msk [vmem:[%s1103_s1 + $0x46] sm:$0x4] %vm8_vm0, %v102_v40   ;;  %422 = vst.msk [vmem:[%s1103_s1 + $0x65] sm:$0x8] %vm8_vm0, %v102_v40   ;;  %v114_v41 = vpop.permute.xlu0 %113  }
  0x8d   :  { %v126_v42 = vpop.permute.xlu1 %125   ;;  %423 = vst.msk [vmem:[%s1103_s1 + $0x9] sm:$0x1] %vm8_vm0, %v114_v41   ;;  %424 = vst.msk [vmem:[%s1103_s1 + $0x28] sm:$0x2] %vm8_vm0, %v114_v41  }
  0x8e   :  { %425 = vst.msk [vmem:[%s1103_s1 + $0x47] sm:$0x4] %vm8_vm0, %v114_v41   ;;  %426 = vst.msk [vmem:[%s1103_s1 + $0x66] sm:$0x8] %vm8_vm0, %v114_v41  }
  0x8f   :  { %427 = vst.msk [vmem:[%s1103_s1 + $0xa] sm:$0x1] %vm8_vm0, %v126_v42   ;;  %428 = vst.msk [vmem:[%s1103_s1 + $0x29] sm:$0x2] %vm8_vm0, %v126_v42  }
  0x90   :  { %429 = vst.msk [vmem:[%s1103_s1 + $0x48] sm:$0x4] %vm8_vm0, %v126_v42   ;;  %430 = vst.msk [vmem:[%s1103_s1 + $0x67] sm:$0x8] %vm8_vm0, %v126_v42   ;;  %v138_v43 = vpop.permute.xlu0 %137  }
  0x91   :  { %v150_v44 = vpop.permute.xlu1 %149   ;;  %431 = vst.msk [vmem:[%s1103_s1 + $0xb] sm:$0x1] %vm8_vm0, %v138_v43   ;;  %432 = vst.msk [vmem:[%s1103_s1 + $0x2a] sm:$0x2] %vm8_vm0, %v138_v43  }
  0x92   :  { %433 = vst.msk [vmem:[%s1103_s1 + $0x49] sm:$0x4] %vm8_vm0, %v138_v43   ;;  %434 = vst.msk [vmem:[%s1103_s1 + $0x68] sm:$0x8] %vm8_vm0, %v138_v43  }
  0x93   :  { %435 = vst.msk [vmem:[%s1103_s1 + $0xc] sm:$0x1] %vm8_vm0, %v150_v44   ;;  %436 = vst.msk [vmem:[%s1103_s1 + $0x2b] sm:$0x2] %vm8_vm0, %v150_v44  }
  0x94   :  { %437 = vst.msk [vmem:[%s1103_s1 + $0x4a] sm:$0x4] %vm8_vm0, %v150_v44   ;;  %438 = vst.msk [vmem:[%s1103_s1 + $0x69] sm:$0x8] %vm8_vm0, %v150_v44   ;;  %v162_v45 = vpop.permute.xlu0 %161  }
  0x95   :  { %v174_v46 = vpop.permute.xlu1 %173   ;;  %439 = vst.msk [vmem:[%s1103_s1 + $0xd] sm:$0x1] %vm8_vm0, %v162_v45   ;;  %440 = vst.msk [vmem:[%s1103_s1 + $0x2c] sm:$0x2] %vm8_vm0, %v162_v45  }
  0x96   :  { %441 = vst.msk [vmem:[%s1103_s1 + $0x4b] sm:$0x4] %vm8_vm0, %v162_v45   ;;  %442 = vst.msk [vmem:[%s1103_s1 + $0x6a] sm:$0x8] %vm8_vm0, %v162_v45  }
  0x97   :  { %443 = vst.msk [vmem:[%s1103_s1 + $0xe] sm:$0x1] %vm8_vm0, %v174_v46   ;;  %444 = vst.msk [vmem:[%s1103_s1 + $0x2d] sm:$0x2] %vm8_vm0, %v174_v46  }
  0x98   :  { %445 = vst.msk [vmem:[%s1103_s1 + $0x4c] sm:$0x4] %vm8_vm0, %v174_v46   ;;  %446 = vst.msk [vmem:[%s1103_s1 + $0x6b] sm:$0x8] %vm8_vm0, %v174_v46   ;;  %v186_v47 = vpop.permute.xlu0 %185  }
  0x99   :  { %v198_v48 = vpop.permute.xlu1 %197   ;;  %447 = vst.msk [vmem:[%s1103_s1 + $0xf] sm:$0x1] %vm8_vm0, %v186_v47   ;;  %448 = vst.msk [vmem:[%s1103_s1 + $0x2e] sm:$0x2] %vm8_vm0, %v186_v47  }
  0x9a   :  { %449 = vst.msk [vmem:[%s1103_s1 + $0x4d] sm:$0x4] %vm8_vm0, %v186_v47   ;;  %450 = vst.msk [vmem:[%s1103_s1 + $0x6c] sm:$0x8] %vm8_vm0, %v186_v47  }
  0x9b   :  { %451 = vst.msk [vmem:[%s1103_s1 + $0x10] sm:$0x1] %vm8_vm0, %v198_v48   ;;  %452 = vst.msk [vmem:[%s1103_s1 + $0x2f] sm:$0x2] %vm8_vm0, %v198_v48  }
  0x9c   :  { %453 = vst.msk [vmem:[%s1103_s1 + $0x4e] sm:$0x4] %vm8_vm0, %v198_v48   ;;  %454 = vst.msk [vmem:[%s1103_s1 + $0x6d] sm:$0x8] %vm8_vm0, %v198_v48   ;;  %v210_v49 = vpop.permute.xlu0 %209  }
  0x9d   :  { %v222_v50 = vpop.permute.xlu1 %221   ;;  %455 = vst.msk [vmem:[%s1103_s1 + $0x11] sm:$0x1] %vm8_vm0, %v210_v49   ;;  %456 = vst.msk [vmem:[%s1103_s1 + $0x30] sm:$0x2] %vm8_vm0, %v210_v49  }
  0x9e   :  { %457 = vst.msk [vmem:[%s1103_s1 + $0x4f] sm:$0x4] %vm8_vm0, %v210_v49   ;;  %458 = vst.msk [vmem:[%s1103_s1 + $0x6e] sm:$0x8] %vm8_vm0, %v210_v49  }
  0x9f   :  { %459 = vst.msk [vmem:[%s1103_s1 + $0x12] sm:$0x1] %vm8_vm0, %v222_v50   ;;  %460 = vst.msk [vmem:[%s1103_s1 + $0x31] sm:$0x2] %vm8_vm0, %v222_v50  }
  0xa0   :  { %461 = vst.msk [vmem:[%s1103_s1 + $0x50] sm:$0x4] %vm8_vm0, %v222_v50   ;;  %462 = vst.msk [vmem:[%s1103_s1 + $0x6f] sm:$0x8] %vm8_vm0, %v222_v50   ;;  %v234_v51 = vpop.permute.xlu0 %233  }
  0xa1   :  { %v246_v52 = vpop.permute.xlu1 %245   ;;  %463 = vst.msk [vmem:[%s1103_s1 + $0x13] sm:$0x1] %vm8_vm0, %v234_v51   ;;  %464 = vst.msk [vmem:[%s1103_s1 + $0x32] sm:$0x2] %vm8_vm0, %v234_v51  }
  0xa2   :  { %465 = vst.msk [vmem:[%s1103_s1 + $0x51] sm:$0x4] %vm8_vm0, %v234_v51   ;;  %466 = vst.msk [vmem:[%s1103_s1 + $0x70] sm:$0x8] %vm8_vm0, %v234_v51  }
  0xa3   :  { %467 = vst.msk [vmem:[%s1103_s1 + $0x14] sm:$0x1] %vm8_vm0, %v246_v52   ;;  %468 = vst.msk [vmem:[%s1103_s1 + $0x33] sm:$0x2] %vm8_vm0, %v246_v52  }
  0xa4   :  { %469 = vst.msk [vmem:[%s1103_s1 + $0x52] sm:$0x4] %vm8_vm0, %v246_v52   ;;  %470 = vst.msk [vmem:[%s1103_s1 + $0x71] sm:$0x8] %vm8_vm0, %v246_v52   ;;  %v258_v53 = vpop.permute.xlu0 %257  }
  0xa5   :  { %v270_v54 = vpop.permute.xlu1 %269   ;;  %471 = vst.msk [vmem:[%s1103_s1 + $0x15] sm:$0x1] %vm8_vm0, %v258_v53   ;;  %472 = vst.msk [vmem:[%s1103_s1 + $0x34] sm:$0x2] %vm8_vm0, %v258_v53  }
  0xa6   :  { %473 = vst.msk [vmem:[%s1103_s1 + $0x53] sm:$0x4] %vm8_vm0, %v258_v53   ;;  %474 = vst.msk [vmem:[%s1103_s1 + $0x72] sm:$0x8] %vm8_vm0, %v258_v53  }
  0xa7   :  { %475 = vst.msk [vmem:[%s1103_s1 + $0x16] sm:$0x1] %vm8_vm0, %v270_v54   ;;  %476 = vst.msk [vmem:[%s1103_s1 + $0x35] sm:$0x2] %vm8_vm0, %v270_v54  }
  0xa8   :  { %477 = vst.msk [vmem:[%s1103_s1 + $0x54] sm:$0x4] %vm8_vm0, %v270_v54   ;;  %478 = vst.msk [vmem:[%s1103_s1 + $0x73] sm:$0x8] %vm8_vm0, %v270_v54   ;;  %v282_v55 = vpop.permute.xlu0 %281  }
  0xa9   :  { %v294_v56 = vpop.permute.xlu1 %293   ;;  %479 = vst.msk [vmem:[%s1103_s1 + $0x17] sm:$0x1] %vm8_vm0, %v282_v55   ;;  %480 = vst.msk [vmem:[%s1103_s1 + $0x36] sm:$0x2] %vm8_vm0, %v282_v55  }
  0xaa   :  { %481 = vst.msk [vmem:[%s1103_s1 + $0x55] sm:$0x4] %vm8_vm0, %v282_v55   ;;  %482 = vst.msk [vmem:[%s1103_s1 + $0x74] sm:$0x8] %vm8_vm0, %v282_v55  }
  0xab   :  { %483 = vst.msk [vmem:[%s1103_s1 + $0x18] sm:$0x1] %vm8_vm0, %v294_v56   ;;  %484 = vst.msk [vmem:[%s1103_s1 + $0x37] sm:$0x2] %vm8_vm0, %v294_v56  }
  0xac   :  { %485 = vst.msk [vmem:[%s1103_s1 + $0x56] sm:$0x4] %vm8_vm0, %v294_v56   ;;  %486 = vst.msk [vmem:[%s1103_s1 + $0x75] sm:$0x8] %vm8_vm0, %v294_v56   ;;  %v306_v57 = vpop.permute.xlu0 %305  }
  0xad   :  { %v318_v58 = vpop.permute.xlu1 %317   ;;  %487 = vst.msk [vmem:[%s1103_s1 + $0x19] sm:$0x1] %vm8_vm0, %v306_v57   ;;  %488 = vst.msk [vmem:[%s1103_s1 + $0x38] sm:$0x2] %vm8_vm0, %v306_v57  }
  0xae   :  { %489 = vst.msk [vmem:[%s1103_s1 + $0x57] sm:$0x4] %vm8_vm0, %v306_v57   ;;  %490 = vst.msk [vmem:[%s1103_s1 + $0x76] sm:$0x8] %vm8_vm0, %v306_v57  }
  0xaf   :  { %491 = vst.msk [vmem:[%s1103_s1 + $0x1a] sm:$0x1] %vm8_vm0, %v318_v58   ;;  %492 = vst.msk [vmem:[%s1103_s1 + $0x39] sm:$0x2] %vm8_vm0, %v318_v58  }
  0xb0   :  { %493 = vst.msk [vmem:[%s1103_s1 + $0x58] sm:$0x4] %vm8_vm0, %v318_v58   ;;  %494 = vst.msk [vmem:[%s1103_s1 + $0x77] sm:$0x8] %vm8_vm0, %v318_v58   ;;  %v330_v59 = vpop.permute.xlu0 %329  }
  0xb1   :  { %v342_v60 = vpop.permute.xlu1 %341   ;;  %495 = vst.msk [vmem:[%s1103_s1 + $0x1b] sm:$0x1] %vm8_vm0, %v330_v59   ;;  %496 = vst.msk [vmem:[%s1103_s1 + $0x3a] sm:$0x2] %vm8_vm0, %v330_v59  }
  0xb2   :  { %497 = vst.msk [vmem:[%s1103_s1 + $0x59] sm:$0x4] %vm8_vm0, %v330_v59   ;;  %498 = vst.msk [vmem:[%s1103_s1 + $0x78] sm:$0x8] %vm8_vm0, %v330_v59  }
  0xb3   :  { %499 = vst.msk [vmem:[%s1103_s1 + $0x1c] sm:$0x1] %vm8_vm0, %v342_v60   ;;  %500 = vst.msk [vmem:[%s1103_s1 + $0x3b] sm:$0x2] %vm8_vm0, %v342_v60  }
  0xb4   :  { %501 = vst.msk [vmem:[%s1103_s1 + $0x5a] sm:$0x4] %vm8_vm0, %v342_v60   ;;  %502 = vst.msk [vmem:[%s1103_s1 + $0x79] sm:$0x8] %vm8_vm0, %v342_v60   ;;  %v354_v61 = vpop.permute.xlu0 %353  }
  0xb5   :  { %v366_v62 = vpop.permute.xlu1 %365   ;;  %503 = vst.msk [vmem:[%s1103_s1 + $0x1d] sm:$0x1] %vm8_vm0, %v354_v61   ;;  %504 = vst.msk [vmem:[%s1103_s1 + $0x3c] sm:$0x2] %vm8_vm0, %v354_v61  }
  0xb6   :  { %505 = vst.msk [vmem:[%s1103_s1 + $0x5b] sm:$0x4] %vm8_vm0, %v354_v61   ;;  %506 = vst.msk [vmem:[%s1103_s1 + $0x7a] sm:$0x8] %vm8_vm0, %v354_v61  }
  0xb7   :  { %507 = vst.msk [vmem:[%s1103_s1 + $0x1e] sm:$0x1] %vm8_vm0, %v366_v62   ;;  %508 = vst.msk [vmem:[%s1103_s1 + $0x3d] sm:$0x2] %vm8_vm0, %v366_v62  }
  0xb8   :  { %509 = vst.msk [vmem:[%s1103_s1 + $0x5c] sm:$0x4] %vm8_vm0, %v366_v62   ;;  %510 = vst.msk [vmem:[%s1103_s1 + $0x7b] sm:$0x8] %vm8_vm0, %v366_v62   ;;  %v378_v63 = vpop.permute.xlu0 %377  }
  0xb9   :  { %511 = vst.msk [vmem:[%s1103_s1 + $0x1f] sm:$0x1] %vm8_vm0, %v378_v63   ;;  %512 = vst.msk [vmem:[%s1103_s1 + $0x3e] sm:$0x2] %vm8_vm0, %v378_v63  }
  0xba   :  { %513 = vst.msk [vmem:[%s1103_s1 + $0x5d] sm:$0x4] %vm8_vm0, %v378_v63   ;;  %514 = vst.msk [vmem:[%s1103_s1 + $0x7c] sm:$0x8] %vm8_vm0, %v378_v63  }

// kernel: tile.8
= control target key start
LH: loop header
LB: loop body
LE: loop exit
PB: predicated region body
PF: predicated region fallthrough
CT: control target
= control target key end

     0   :  { %s22_s0 = inlined_call_operand.vmem [shape: f32[32], index: 0, kind: input, shape index: {}]   ;;  %s23_s1 = inlined_call_operand.vmem [shape: f32[4,32], index: 1, kind: output, shape index: {}]  }
   0x1   :  { %v4_v0 = vld [vmem:[%s22_s0] ss:$0 sm:$0xff] }
   0x2   :  { %5 = vst [vmem:[%s23_s1] sm:$0xf] %v4_v0 }

// kernel: upsample.1
= control target key start
LH: loop header
LB: loop body
LE: loop exit
PB: predicated region body
PF: predicated region fallthrough
CT: control target
= control target key end

     0   :  { %s2204_s12 = smov 0   ;;  %s2603_s0 = inlined_call_operand.vmem [shape: f32[2,32,290], index: 0, kind: input, shape index: {}]   ;;  %s2604_s1 = inlined_call_operand.vmem [shape: bf16[128,288], index: 1, kind: input, shape index: {}]   ;;  %s2605_s2 = inlined_call_operand.vmem [shape: f32[128,1], index: 2, kind: input, shape index: {}]   ;;  %s2606_s3 = inlined_call_operand.vmem [shape: bf16[2,128,256], index: 3, kind: output, shape index: {}]  }
   0x1 LB: > { %s1694_s13 = sadd.s32 4294967295, %s2173_s12   ;;  %p1698_p0 = scmp.ge.s32.totalorder %s2173_s12, 1  ;;  %s2173_s12 = sphi %s2204_s12, %s13_s12  }
   0x2   : > { %p137_p1 = scmp.lt.s32.totalorder %s2173_s12, 3 }
   0x4   : > { %p138_p2 = pnand %p1698_p0, %p137_p1 }
   0x5   : > { %p161_p3 = scmp.lt.s32.totalorder (!%p138_p2), %s1694_s13, 1  ;;  %s2175_s18 = smov (!%p138_p2), 112  }
   0x6   : > { %141 = sbr.rel (%p138_p2) target bundleno = 506 (0x1fa), region = 32  ;;  %s2176_s19 = smov (!%p138_p2), 126  }
   0x7   : > { %s2177_s20 = smov (!%p138_p2), 127   ;;  %s2178_s21 = smov (!%p138_p2), 95  }
   0x8   : > { %s2179_s22 = smov (!%p138_p2), 96   ;;  %s2180_s23 = smov (!%p138_p2), 110  }
   0x9   : > { %s2181_s24 = smov (!%p138_p2), 111   ;;  %s2182_s27 = smov (!%p138_p2), 94  }
   0xb   : > { %s2616_s13 = smov (!%p161_p3, %s1694_s13), 1  ;;  %v2137_v30 = vld [vmem:[%s2604_s1 + $0x4] ss:$12 sps:$4 sm:$0xff]   ;;  %v2183_v31 = vmov 0   ;;  %v184_v32 = vlaneseq  ;;  %vm446_vm0 = vcmask 916480   ;;  %vm369_vm5 = vcmask 1031168  }
   0xc   : > { %s1965_s14 = smul.u32 96, %s2616_s13  ;;  %1333 = vmatprep.mubr.bf16.mxu0 %v2137_v30  ;;  %1446 = vmatprep.mubr.bf16.mxu1 %v2183_v31  ;;  %vm311_vm10 = vcmask 1043456   ;;  %vm313_vm11 = vcmask 1039360   ;;  %vm719_vm12 = vcmask 777216   ;;  %vm641_vm13 = vcmask 785408   ;;  %s1820_s4 = sshll.u32 %s2616_s13, 7 }
   0xd   : > { %2134 = vset.pattern.permute.xlu1 %v2183_v31  ;;  %2133 = vset.pattern.permute.xlu0 %v2183_v31  ;;  %v185_v33 = vand.u32 127, %v184_v32  ;;  %vm564_vm14 = vcmask 900096   ;;  %vm524_vm15 = vcmask 908288   ;;  %s2582_s7 = scalar_lea.vmem %s2606_s3, %s1820_s4 }
   0xe   : > { %s165_s17 = scalar_lea.vmem %s2603_s0, %s1965_s14 }
   0xf   : > { %v2218_v0 = vld [vmem:[%s165_s17 + $0x38] sm:$0xff]  ;;  %v180_v1 = vld [vmem:[%s165_s17 + $0x40] sm:$0xff]  ;;  %v2220_v2 = vld [vmem:[%s165_s17 + $0x30] sm:$0xff]  ;;  %v186_v34 = vadd.s32 128, %v185_v33  ;;  %v191_v38 = vand.u32 15, %v185_v33 }
  0x10   : > { %v2223_v3 = vpack.i.bf16 %v180_v1, %v2218_v0  ;;  %v2225_v4 = vld [vmem:[%s165_s17 + $0x48] sm:$0xff]  ;;  %v2227_v5 = vld [vmem:[%s165_s17 + $0x50] sm:$0xff]  ;;  %v183_v6 = vld [vmem:[%s165_s17 + $0x58] sm:$0xff]  ;;  %v1829_v18 = vpack.c.bf16 %v2218_v0, %v2220_v2  ;;  %v1830_v19 = vpack.c.bf16 %v180_v1, %v180_v1 }
  0x11   : > { %v2231_v7 = vpack.i.bf16 %v2225_v4, %v2220_v2  ;;  %v2233_v8 = vld [vmem:[%s165_s17 + $0x8] sm:$0xff]  ;;  %v174_v9 = vld [vmem:[%s165_s17 + $0x10] sm:$0xff]  ;;  %v2237_v10 = vpack.i.bf16 %v183_v6, %v2227_v5  ;;  %v2239_v11 = vld [vmem:[%s165_s17 + $0x20] sm:$0xff]  ;;  %v1831_v20 = vpack.c.bf16 %v2227_v5, %v2225_v4  ;;  %v1832_v21 = vpack.c.bf16 %v183_v6, %v183_v6 }
  0x12   : > { %1984 = vrot.lane.b32.xlu0 %v2223_v3, %s2175_s18  ;;  %v177_v12 = vld [vmem:[%s165_s17 + $0x28] sm:$0xff]  ;;  %v2241_v13 = vld [vmem:[%s165_s17] sm:$0xff]  ;;  %v2245_v14 = vpack.i.bf16 %v174_v9, %v2233_v8  ;;  %v2247_v15 = vld [vmem:[%s165_s17 + $0x18] sm:$0xff]  ;;  %v1826_v23 = vpack.c.bf16 %v174_v9, %v174_v9  ;;  %v1918_v25 = vpack.c.bf16 %v2227_v5, %v2218_v0  ;;  %v1921_v27 = vpack.c.bf16 %v2225_v4, %v2220_v2 }
  0x13   : > { %1994 = vrot.lane.b32.xlu1 %v2231_v7, %s2175_s18  ;;  %v2251_v16 = vpack.i.bf16 %v177_v12, %v2239_v11  ;;  %v2255_v17 = vpack.i.bf16 %v2247_v15, %v2241_v13  ;;  %v1825_v22 = vpack.c.bf16 %v2233_v8, %v2241_v13  ;;  %v1827_v24 = vpack.c.bf16 %v2239_v11, %v2247_v15  ;;  %v886_v2 = vld [vmem:[%s2605_s2 + $0x30] sm:$0xff]  ;;  %v887_v4 = vld [vmem:[%s2605_s2 + $0x38] sm:$0xff] }
  0x14   : > { %v1828_v26 = vpack.c.bf16 %v177_v12, %v177_v12  ;;  %v1924_v28 = vpack.c.bf16 %v2239_v11, %v2233_v8  ;;  %v1927_v29 = vpack.c.bf16 %v2247_v15, %v2241_v13  ;;  %v198_v36 = vand.u32 15, %v186_v34  ;;  %v889_v13 = vld [vmem:[%s2605_s2 + $0x48] sm:$0xff] }
  0x15   : > { %vm211_vm2 = vcmp.ge.s32.totalorder %v191_v38, 1  ;;  %vm213_vm8 = vcmp.le.s32.totalorder %v191_v38, 14 }
  0x16   : > { %1989 = vrot.lane.b32.xlu0 %v2237_v10, %s2175_s18  ;;  %vm212_vm1 = vcmp.ge.s32.totalorder %v198_v36, 1  ;;  %vm2314_vm4 = vmpackc.low %vm211_vm2, %vm211_vm2  ;;  %vm214_vm6 = vcmp.le.s32.totalorder %v198_v36, 14  ;;  %v2145_v36 = vld [vmem:[%s2604_s1 + $0x20] ss:$12 sps:$4 sm:$0xff]  }
  0x17   : > { %1999 = vrot.lane.b32.xlu1 %v2245_v14, %s2175_s18  ;;  %vm2309_vm3 = vmpackc.low %vm212_vm1, %vm212_vm1  ;;  %vm1276_vm1 = vcmask 261120  }
  0x18   : > { %vm2332_vm7 = vmpackc.low %vm214_vm6, %vm214_vm6 }
  0x19   : > { %vm2340_vm9 = vmpackc.low %vm213_vm8, %vm213_vm8 }
  0x1a   : > { %2004 = vrot.lane.b32.xlu0 %v2251_v16, %s2175_s18 }
  0x1b   : > { %2009 = vrot.lane.b32.xlu1 %v2255_v17, %s2175_s18 }
  0x1e   : > { %2014 = vrot.lane.b32.xlu0 %v2223_v3, %s2176_s19 }
  0x1f   : > { %2019 = vrot.lane.b32.xlu1 %v2237_v10, %s2176_s19 }
  0x22   : > { %2024 = vrot.lane.b32.xlu0 %v2231_v7, %s2176_s19 }
  0x23   : > { %2029 = vrot.lane.b32.xlu1 %v2245_v14, %s2176_s19 }
  0x26   : > { %2034 = vrot.lane.b32.xlu0 %v2251_v16, %s2176_s19 }
  0x27   : > { %295 = vrot.lane.b32.xlu1 %v1829_v18, %s2177_s20 }
  0x2a   : > { %297 = vrot.lane.b32.xlu0 %v1830_v19, %s2177_s20 }
  0x2b   : > { %299 = vrot.lane.b32.xlu1 %v1831_v20, %s2177_s20 }
  0x2e   : > { %301 = vrot.lane.b32.xlu0 %v1832_v21, %s2177_s20 }
  0x2f   : > { %2039 = vrot.lane.b32.xlu1 %v2255_v17, %s2176_s19 }
  0x32   : > { %287 = vrot.lane.b32.xlu0 %v1825_v22, %s2177_s20 }
  0x33   : > { %289 = vrot.lane.b32.xlu1 %v1826_v23, %s2177_s20 }
  0x36   : > { %291 = vrot.lane.b32.xlu0 %v1827_v24, %s2177_s20 }
  0x37   : > { %293 = vrot.lane.b32.xlu1 %v1828_v26, %s2177_s20 }
  0x3a   : > { %702 = vrot.lane.b32.xlu0 %v1829_v18, %s2178_s21 }
  0x3b   : > { %704 = vrot.lane.b32.xlu1 %v1830_v19, %s2178_s21 }
  0x3e   : > { %706 = vrot.lane.b32.xlu0 %v1831_v20, %s2178_s21 }
  0x3f   : > { %708 = vrot.lane.b32.xlu1 %v1832_v21, %s2178_s21 }
  0x42   : > { %694 = vrot.lane.b32.xlu0 %v1825_v22, %s2178_s21 }
  0x43   : > { %696 = vrot.lane.b32.xlu1 %v1826_v23, %s2178_s21 }
  0x46   : > { %698 = vrot.lane.b32.xlu0 %v1827_v24, %s2178_s21 }
  0x47   : > { %700 = vrot.lane.b32.xlu1 %v1828_v26, %s2178_s21 }
  0x4a   : > { %2044 = vrot.lane.b32.xlu0 %v2223_v3, %s2179_s22 }
  0x4b   : > { %2049 = vrot.lane.b32.xlu1 %v2237_v10, %s2179_s22 }
  0x4e   : > { %2054 = vrot.lane.b32.xlu0 %v2231_v7, %s2179_s22 }
  0x4f   : > { %2059 = vrot.lane.b32.xlu1 %v2245_v14, %s2179_s22 }
  0x52   : > { %2064 = vrot.lane.b32.xlu0 %v2251_v16, %s2179_s22 }
  0x53   : > { %2069 = vrot.lane.b32.xlu1 %v2255_v17, %s2179_s22 }
  0x56   : > { %2074 = vrot.lane.b32.xlu0 %v2223_v3, %s2180_s23 }
  0x57   : > { %2079 = vrot.lane.b32.xlu1 %v2237_v10, %s2180_s23 }
  0x5a   : > { %2084 = vrot.lane.b32.xlu0 %v2231_v7, %s2180_s23 }
  0x5b   : > { %2089 = vrot.lane.b32.xlu1 %v2245_v14, %s2180_s23 }
  0x5e   : > { %2094 = vrot.lane.b32.xlu0 %v2251_v16, %s2180_s23 }
  0x5f   : > { %507 = vrot.lane.b32.xlu1 %v1829_v18, %s2181_s24 }
  0x62   : > { %509 = vrot.lane.b32.xlu0 %v1830_v19, %s2181_s24 }
  0x63   : > { %511 = vrot.lane.b32.xlu1 %v1831_v20, %s2181_s24 }
  0x66   : > { %513 = vrot.lane.b32.xlu0 %v1832_v21, %s2181_s24 }
  0x67   : > { %2099 = vrot.lane.b32.xlu1 %v2255_v17, %s2180_s23 }
  0x6a   : > { %499 = vrot.lane.b32.xlu0 %v1825_v22, %s2181_s24  ;;  %v2146_v22 = vld [vmem:[%s2604_s1 + $0x4c] ss:$12 sps:$4 sm:$0xff]  }
  0x6b   : > { %501 = vrot.lane.b32.xlu1 %v1826_v23, %s2181_s24 }
  0x6e   : > { %503 = vrot.lane.b32.xlu0 %v1827_v24, %s2181_s24 }
  0x6f   : > { %505 = vrot.lane.b32.xlu1 %v1828_v26, %s2181_s24 }
  0x72   : > { %2104 = vrot.lane.b32.xlu0 %v2223_v3, %s2182_s27 }
  0x73   : > { %2109 = vrot.lane.b32.xlu1 %v2237_v10, %s2182_s27 }
  0x76   : > { %2114 = vrot.lane.b32.xlu0 %v2231_v7, %s2182_s27 }
  0x77   : > { %2119 = vrot.lane.b32.xlu1 %v2245_v14, %s2182_s27 }
  0x7a   : > { %2124 = vrot.lane.b32.xlu0 %v2251_v16, %s2182_s27 }
  0x7b   : > { %2129 = vrot.lane.b32.xlu1 %v2255_v17, %s2182_s27 }
  0x84   : > { %v1985_v35 = vpop.permute.xlu0 %1984 }
  0x85   : > { %v1995_v37 = vpop.permute.xlu1 %1994  ;;  %v1987_v39 = vunpack.i.h.bf16 %v1985_v35  ;;  %v1986_v40 = vunpack.i.l.bf16 %v1985_v35 }
  0x86   : > { %v1996_v41 = vunpack.i.l.bf16 %v1995_v37  ;;  %v1997_v43 = vunpack.i.h.bf16 %v1995_v37 }
  0x87   : > { %v452_v47 = vsel %vm446_vm0, %v1986_v40, %v1987_v39 }
  0x88   : > { %v1990_v42 = vpop.permute.xlu0 %1989  ;;  %v451_v48 = vsel %vm446_vm0, %v1996_v41, %v1986_v40 }
  0x89   : > { %v1992_v44 = vunpack.i.h.bf16 %v1990_v42  ;;  %v1991_v45 = vunpack.i.l.bf16 %v1990_v42  ;;  %v2000_v46 = vpop.permute.xlu1 %1999 }
  0x8a   : > { %v2002_v49 = vunpack.i.h.bf16 %v2000_v46  ;;  %v2001_v50 = vunpack.i.l.bf16 %v2000_v46 }
  0x8b   : > { %v454_v51 = vsel %vm446_vm0, %v1991_v45, %v1992_v44  ;;  %v453_v53 = vsel %vm446_vm0, %v1997_v43, %v1991_v45 }
  0x8c   : > { %v2005_v54 = vpop.permute.xlu0 %2004  ;;  %v1894_v55 = vpack.c.bf16 %v454_v51, %v452_v47  ;;  %v1897_v57 = vpack.c.bf16 %v453_v53, %v451_v48  ;;  %v448_v63 = vsel %vm446_vm0, %v2001_v50, %v2002_v49 }
  0x8d   : > { %v2007_v58 = vunpack.i.h.bf16 %v2005_v54  ;;  %v2006_v59 = vunpack.i.l.bf16 %v2005_v54  ;;  %v2010_v60 = vpop.permute.xlu1 %2009 }
  0x8e   : > { %v2012_v61 = vunpack.i.h.bf16 %v2010_v60  ;;  %v2011_v62 = vunpack.i.l.bf16 %v2010_v60  ;;  %1895 = vmatprep.subr.msk.bf16.mxu0 %vm2309_vm3, %v1894_v55 }
  0x8f   : > { %v450_v1 = vsel %vm446_vm0, %v2006_v59, %v2007_v58  ;;  %1898 = vmatpush1.bf16.msk.msra.mxu0 %vm2314_vm4, %v1897_v57 }
  0x90   : > { %v1900_v3 = vpack.c.bf16 %v450_v1, %v448_v63  ;;  %v449_v6 = vsel %vm446_vm0, %v2012_v61, %v2006_v59  ;;  %v447_v7 = vsel %vm446_vm0, %v2011_v62, %v2001_v50  ;;  %v2015_v9 = vpop.permute.xlu0 %2014  ;;  %vm759_vm0 = vcmask 769024  }
  0x91   : > { %v1903_v10 = vpack.c.bf16 %v449_v6, %v447_v7  ;;  %v2017_v12 = vunpack.i.h.bf16 %v2015_v9  ;;  %v2016_v14 = vunpack.i.l.bf16 %v2015_v9  ;;  %v2020_v16 = vpop.permute.xlu1 %2019 }
  0x92   : > { %v2022_v17 = vunpack.i.h.bf16 %v2020_v16  ;;  %v2021_v18 = vunpack.i.l.bf16 %v2020_v16  ;;  %1901 = vmatprep.subr.msk.bf16.mxu0 %vm2309_vm3, %v1900_v3 }
  0x93   : > { %v375_v19 = vsel %vm369_vm5, %v2016_v14, %v2017_v12  ;;  %1904 = vmatpush1.bf16.msk.msra.mxu0 %vm2314_vm4, %v1903_v10 }
  0x94   : > { %v377_v20 = vsel %vm369_vm5, %v2021_v18, %v2022_v17  ;;  %v2025_v21 = vpop.permute.xlu0 %2024 }
  0x95   : > { %v1906_v23 = vpack.c.bf16 %v377_v20, %v375_v19  ;;  %v2027_v24 = vunpack.i.h.bf16 %v2025_v21  ;;  %v2026_v26 = vunpack.i.l.bf16 %v2025_v21  ;;  %v2030_v30 = vpop.permute.xlu1 %2029 }
  0x96   : > { %v2032_v34 = vunpack.i.h.bf16 %v2030_v30  ;;  %v2031_v35 = vunpack.i.l.bf16 %v2030_v30 }
  0x97   : > { %v374_v32 = vsel %vm369_vm5, %v2026_v26, %v2016_v14  ;;  %v376_v33 = vsel %vm369_vm5, %v2027_v24, %v2021_v18  ;;  %1907 = vmatprep.subr.msk.bf16.mxu0 %vm2332_vm7, %v1906_v23 }
  0x98   : > { %v1909_v37 = vpack.c.bf16 %v376_v33, %v374_v32  ;;  %v2035_v39 = vpop.permute.xlu0 %2034  ;;  %v371_v42 = vsel %vm369_vm5, %v2031_v35, %v2032_v34  ;;  %v881_v32 = vld [vmem:[%s2605_s2 + $0x8] sm:$0xff]  ;;  %v880_v33 = vld [vmem:[%s2605_s2] sm:$0xff] }
  0x99   : > { %v2037_v38 = vunpack.i.h.bf16 %v2035_v39  ;;  %v2036_v40 = vunpack.i.l.bf16 %v2035_v39  ;;  %v296_v41 = vpop.permute.xlu1 %295  ;;  %903 = vperm.xlu1 %2134, %v881_v32   ;;  %898 = vperm.xlu0 %2133, %v880_v33   ;;  %v882_v39 = vld [vmem:[%s2605_s2 + $0x10] sm:$0xff] }
  0x9a   : > { %1910 = vmatpush1.bf16.msk.msra.mxu0 %vm2340_vm9, %v1909_v37  ;;  %v307_v48 = vrot.slane %v296_v41, 4 }
  0x9b   : > { %v373_v43 = vsel %vm369_vm5, %v2036_v40, %v2037_v38  ;;  %v883_v38 = vld [vmem:[%s2605_s2 + $0x18] sm:$0xff] }
  0x9c   : > { %v1912_v44 = vpack.c.bf16 %v373_v43, %v371_v42  ;;  %v298_v45 = vpop.permute.xlu0 %297 }
  0x9d   : > { %v308_v46 = vrot.slane %v298_v45, 4  ;;  %v300_v47 = vpop.permute.xlu1 %299  ;;  %908 = vperm.xlu1 %2134, %v882_v39   ;;  %913 = vperm.xlu0 %2133, %v883_v38  }
  0x9e   : > { %1913 = vmatprep.subr.msk.bf16.mxu0 %vm2332_vm7, %v1912_v44  ;;  %v309_v51 = vrot.slane %v300_v47, 4 }
  0x9f   : > { %v317_v50 = vsel %vm311_vm10, %v307_v48, %v308_v46  ;;  %v884_v46 = vld [vmem:[%s2605_s2 + $0x20] sm:$0xff] }
  0xa0   : > { %v302_v49 = vpop.permute.xlu0 %301  ;;  %v318_v62 = vsel %vm313_vm11, %v296_v41, %v317_v50 }
  0xa1   : > { %v310_v53 = vrot.slane %v302_v49, 4  ;;  %v2040_v54 = vpop.permute.xlu1 %2039  ;;  %918 = vperm.xlu1 %2134, %v884_v46  }
  0xa2   : > { %v2042_v55 = vunpack.i.h.bf16 %v2040_v54  ;;  %v2041_v57 = vunpack.i.l.bf16 %v2040_v54 }
  0xa3   : > { %v319_v58 = vsel %vm311_vm10, %v309_v51, %v310_v53 }
  0xa4   : > { %v372_v59 = vsel %vm369_vm5, %v2042_v55, %v2036_v40  ;;  %v370_v60 = vsel %vm369_vm5, %v2041_v57, %v2031_v35  ;;  %v288_v61 = vpop.permute.xlu0 %287  ;;  %v320_v63 = vsel %vm313_vm11, %v300_v47, %v319_v58  ;;  %v885_v47 = vld [vmem:[%s2605_s2 + $0x28] sm:$0xff]  ;;  %v888_v57 = vld [vmem:[%s2605_s2 + $0x40] sm:$0xff] }
  0xa5   : > { %v1915_v1 = vpack.c.bf16 %v372_v59, %v370_v60  ;;  %v290_v3 = vpop.permute.xlu1 %289  ;;  %v1765_v6 = vcombine.high %v318_v62, %v320_v63  ;;  %v303_v9 = vrot.slane %v288_v61, 4  ;;  %v1764_v16 = vcombine.low %v318_v62, %v320_v63  ;;  %923 = vperm.xlu0 %2133, %v885_v47   ;;  %928 = vperm.xlu1 %2134, %v886_v2  }
  0xa6   : > { %v304_v7 = vrot.slane %v290_v3, 4 }
  0xa7   : > { %1916 = vmatpush1.bf16.msk.msra.mxu0 %vm2340_vm9, %v1915_v1 }
  0xa8   : > { %1309 = vmatprep.subr.bf16.mxu0 %v1765_v6  ;;  %v292_v10 = vpop.permute.xlu0 %291  ;;  %v312_v17 = vsel %vm311_vm10, %v303_v9, %v304_v7  ;;  %v890_v9 = vld [vmem:[%s2605_s2 + $0x50] sm:$0xff] }
  0xa9   : > { %v294_v12 = vpop.permute.xlu1 %293  ;;  %v305_v14 = vrot.slane %v292_v10, 4  ;;  %v314_v21 = vsel %vm313_vm11, %v288_v61, %v312_v17  ;;  %933 = vperm.xlu0 %2133, %v887_v4   ;;  %938 = vperm.xlu1 %2134, %v888_v57   ;;  %v891_v17 = vld [vmem:[%s2605_s2 + $0x58] sm:$0xff] }
  0xaa   : > { %v306_v18 = vrot.slane %v294_v12, 4 }
  0xab   : > { %1310 = vmatpush1.bf16.msra.mxu0 %v1764_v16 }
  0xac   : > { %v315_v19 = vsel %vm311_vm10, %v305_v14, %v306_v18  ;;  %v703_v20 = vpop.permute.xlu0 %702 }
  0xad   : > { %v316_v23 = vsel %vm313_vm11, %v292_v10, %v315_v19  ;;  %v705_v24 = vpop.permute.xlu1 %704  ;;  %v714_v35 = vrot.slane %v703_v20, 4  ;;  %943 = vperm.xlu0 %2133, %v889_v13   ;;  %948 = vperm.xlu1 %2134, %v890_v9  }
  0xae   : > { %v1762_v26 = vcombine.low %v314_v21, %v316_v23  ;;  %v1763_v30 = vcombine.high %v314_v21, %v316_v23  ;;  %v715_v34 = vrot.slane %v705_v24, 4 }
  0xb0   : > { %1311 = vmatprep.subr.bf16.mxu0 %v1763_v30  ;;  %v707_v37 = vpop.permute.xlu0 %706  ;;  %v723_v43 = vsel %vm311_vm10, %v714_v35, %v715_v34  ;;  %v893_v34 = vld [vmem:[%s2605_s2 + $0x68] sm:$0xff] }
  0xb1   : > { %v709_v40 = vpop.permute.xlu1 %708  ;;  %1312 = vmatpush1.bf16.msra.mxu0 %v1762_v26  ;;  %v716_v41 = vrot.slane %v707_v37, 4  ;;  %v724_v49 = vsel %vm719_vm12, %v703_v20, %v723_v43  ;;  %953 = vperm.xlu0 %2133, %v891_v17   ;;  %v892_v26 = vld [vmem:[%s2605_s2 + $0x60] sm:$0xff] }
  0xb2   : > { %v717_v42 = vrot.slane %v709_v40, 4  ;;  %1919 = vmatprep.subr.msk.bf16.mxu0 %vm2309_vm3, %v1918_v25  ;;  %958 = vperm.xlu1 %2134, %v892_v26  }
  0xb4   : > { %v725_v44 = vsel %vm311_vm10, %v716_v41, %v717_v42  ;;  %v695_v45 = vpop.permute.xlu0 %694 }
  0xb5   : > { %v726_v0 = vsel %vm719_vm12, %v707_v37, %v725_v44  ;;  %v697_v5 = vpop.permute.xlu1 %696  ;;  %1922 = vmatpush1.bf16.msk.msra.mxu0 %vm2314_vm4, %v1921_v27  ;;  %v710_v48 = vrot.slane %v695_v45, 4  ;;  %963 = vperm.xlu0 %2133, %v893_v34   ;;  %v894_v44 = vld [vmem:[%s2605_s2 + $0x70] sm:$0xff] }
  0xb6   : > { %v711_v25 = vrot.slane %v697_v5, 4  ;;  %1925 = vmatprep.subr.msk.bf16.mxu0 %vm2309_vm3, %v1924_v28  ;;  %v1789_v50 = vcombine.high %v724_v49, %v726_v0  ;;  %v1788_v53 = vcombine.low %v724_v49, %v726_v0  ;;  %v895_v5 = vld [vmem:[%s2605_s2 + $0x78] sm:$0xff]  ;;  %968 = vperm.xlu1 %2134, %v894_v44  }
  0xb8   : > { %v699_v51 = vpop.permute.xlu0 %698  ;;  %v718_v11 = vsel %vm311_vm10, %v710_v48, %v711_v25 }
  0xb9   : > { %v701_v27 = vpop.permute.xlu1 %700  ;;  %1928 = vmatpush1.bf16.msk.msra.mxu0 %vm2314_vm4, %v1927_v29  ;;  %v712_v8 = vrot.slane %v699_v51, 4  ;;  %v720_v15 = vsel %vm719_vm12, %v695_v45, %v718_v11  ;;  %973 = vperm.xlu0 %2133, %v895_v5  }
  0xba   : > { %v713_v28 = vrot.slane %v701_v27, 4  ;;  %1317 = vmatprep.subr.bf16.mxu0 %v1789_v50 }
  0xbc   : > { %v721_v54 = vsel %vm311_vm10, %v712_v8, %v713_v28  ;;  %v2045_v55 = vpop.permute.xlu0 %2044 }
  0xbd   : > { %v722_v29 = vsel %vm719_vm12, %v699_v51, %v721_v54  ;;  %v2050_v58 = vpop.permute.xlu1 %2049  ;;  %1318 = vmatpush2.bf16.msra.mxu0 %v1788_v53  ;;  %v2047_v59 = vunpack.i.h.bf16 %v2045_v55  ;;  %v2046_v60 = vunpack.i.l.bf16 %v2045_v55 }
  0xbe   : > { %v1786_v61 = vcombine.low %v720_v15, %v722_v29  ;;  %v1787_v62 = vcombine.high %v720_v15, %v722_v29  ;;  %v2052_v63 = vunpack.i.h.bf16 %v2050_v58  ;;  %v2051_v1 = vunpack.i.l.bf16 %v2050_v58 }
  0xbf   : > { %v647_v3 = vsel %vm641_vm13, %v2046_v60, %v2047_v59 }
  0xc0   : > { %v649_v6 = vsel %vm641_vm13, %v2051_v1, %v2052_v63  ;;  %1319 = vmatprep.subr.bf16.mxu0 %v1787_v62  ;;  %v2055_v7 = vpop.permute.xlu0 %2054 }
  0xc1   : > { %v1930_v10 = vpack.c.bf16 %v649_v6, %v647_v3  ;;  %v2060_v12 = vpop.permute.xlu1 %2059  ;;  %1320 = vmatpush2.bf16.msra.mxu0 %v1786_v61  ;;  %v2057_v14 = vunpack.i.h.bf16 %v2055_v7  ;;  %v2056_v16 = vunpack.i.l.bf16 %v2055_v7 }
  0xc2   : > { %v2062_v18 = vunpack.i.h.bf16 %v2060_v12  ;;  %v2061_v19 = vunpack.i.l.bf16 %v2060_v12 }
  0xc3   : > { %v648_v20 = vsel %vm641_vm13, %v2057_v14, %v2051_v1  ;;  %v646_v21 = vsel %vm641_vm13, %v2056_v16, %v2046_v60  ;;  %1931 = vmatprep.subr.msk.bf16.mxu0 %vm2309_vm3, %v1930_v10 }
  0xc4   : > { %v1933_v23 = vpack.c.bf16 %v648_v20, %v646_v21  ;;  %v2065_v24 = vpop.permute.xlu0 %2064  ;;  %v643_v39 = vsel %vm641_vm13, %v2061_v19, %v2062_v18 }
  0xc5   : > { %v2070_v30 = vpop.permute.xlu1 %2069  ;;  %v2067_v32 = vunpack.i.h.bf16 %v2065_v24  ;;  %v2066_v33 = vunpack.i.l.bf16 %v2065_v24 }
  0xc6   : > { %v2072_v35 = vunpack.i.h.bf16 %v2070_v30  ;;  %v2071_v37 = vunpack.i.l.bf16 %v2070_v30  ;;  %1934 = vmatpush2.bf16.msk.msra.mxu0 %vm2314_vm4, %v1933_v23 }
  0xc7   : > { %v645_v38 = vsel %vm641_vm13, %v2066_v33, %v2067_v32 }
  0xc8   : > { %v642_v40 = vsel %vm641_vm13, %v2071_v37, %v2061_v19  ;;  %v644_v41 = vsel %vm641_vm13, %v2072_v35, %v2066_v33  ;;  %v1936_v42 = vpack.c.bf16 %v645_v38, %v643_v39  ;;  %v2075_v43 = vpop.permute.xlu0 %2074 }
  0xc9   : > { %v1939_v45 = vpack.c.bf16 %v644_v41, %v642_v40  ;;  %v2080_v46 = vpop.permute.xlu1 %2079  ;;  %v2077_v47 = vunpack.i.h.bf16 %v2075_v43  ;;  %v2076_v0 = vunpack.i.l.bf16 %v2075_v43 }
  0xca   : > { %v2082_v25 = vunpack.i.h.bf16 %v2080_v46  ;;  %v2081_v48 = vunpack.i.l.bf16 %v2080_v46  ;;  %1937 = vmatprep.subr.msk.bf16.mxu0 %vm2309_vm3, %v1936_v42 }
  0xcb   : > { %v570_v49 = vsel %vm564_vm14, %v2076_v0, %v2077_v47  ;;  %1940 = vmatpush2.bf16.msk.msra.mxu0 %vm2314_vm4, %v1939_v45 }
  0xcc   : > { %v572_v50 = vsel %vm564_vm14, %v2081_v48, %v2082_v25  ;;  %v2085_v51 = vpop.permute.xlu0 %2084 }
  0xcd   : > { %v1942_v2 = vpack.c.bf16 %v572_v50, %v570_v49  ;;  %v2090_v4 = vpop.permute.xlu1 %2089  ;;  %v2087_v27 = vunpack.i.h.bf16 %v2085_v51  ;;  %v2086_v8 = vunpack.i.l.bf16 %v2085_v51 }
  0xce   : > { %v2092_v11 = vunpack.i.h.bf16 %v2090_v4  ;;  %v2091_v28 = vunpack.i.l.bf16 %v2090_v4 }
  0xcf   : > { %v571_v53 = vsel %vm564_vm14, %v2087_v27, %v2081_v48  ;;  %v569_v52 = vsel %vm564_vm14, %v2086_v8, %v2076_v0  ;;  %1943 = vmatprep.subr.msk.bf16.mxu0 %vm2332_vm7, %v1942_v2  ;;  %v2135_v48 = vld [vmem:[%s2604_s1] ss:$12 sps:$4 sm:$0xff]   ;;  %v2138_v27 = vld [vmem:[%s2604_s1 + $0x1c] ss:$12 sps:$4 sm:$0xff]  }
  0xd0   : > { %v1945_v56 = vpack.c.bf16 %v571_v53, %v569_v52  ;;  %v2095_v54 = vpop.permute.xlu0 %2094  ;;  %v566_v15 = vsel %vm564_vm14, %v2091_v28, %v2092_v11 }
  0xd1   : > { %v508_v55 = vpop.permute.xlu1 %507  ;;  %v2097_v57 = vunpack.i.h.bf16 %v2095_v54  ;;  %v2096_v13 = vunpack.i.l.bf16 %v2095_v54 }
  0xd2   : > { %1946 = vmatpush2.bf16.msk.msra.mxu0 %vm2340_vm9, %v1945_v56  ;;  %v519_v62 = vrot.slane %v508_v55, 4 }
  0xd3   : > { %v568_v29 = vsel %vm564_vm14, %v2096_v13, %v2097_v57 }
  0xd4   : > { %v1948_v58 = vpack.c.bf16 %v568_v29, %v566_v15  ;;  %v510_v59 = vpop.permute.xlu0 %509 }
  0xd5   : > { %v512_v60 = vpop.permute.xlu1 %511  ;;  %v520_v61 = vrot.slane %v510_v59, 4 }
  0xd6   : > { %1949 = vmatprep.subr.msk.bf16.mxu0 %vm2332_vm7, %v1948_v58  ;;  %v521_v1 = vrot.slane %v512_v60, 4 }
  0xd7   : > { %v528_v3 = vsel %vm311_vm10, %v519_v62, %v520_v61  ;;  %v2140_v62 = vld [vmem:[%s2604_s1 + $0x18] ss:$12 sps:$4 sm:$0xff]  }
  0xd8   : > { %v514_v63 = vpop.permute.xlu0 %513  ;;  %v529_v18 = vsel %vm524_vm15, %v508_v55, %v528_v3  ;;  %v2141_v3 = vld [vmem:[%s2604_s1 + $0x8] ss:$12 sps:$4 sm:$0xff]  }
  0xd9   : > { %v2100_v6 = vpop.permute.xlu1 %2099  ;;  %v522_v7 = vrot.slane %v514_v63, 4 }
  0xda   : > { %v2102_v9 = vunpack.i.h.bf16 %v2100_v6  ;;  %v2101_v10 = vunpack.i.l.bf16 %v2100_v6  ;;  %v2144_v6 = vld [vmem:[%s2604_s1 + $0x30] ss:$12 sps:$4 sm:$0xff]  }
  0xdb   : > { %v530_v12 = vsel %vm311_vm10, %v521_v1, %v522_v7  ;;  %v2142_v1 = vld [vmem:[%s2604_s1 + $0x34] ss:$12 sps:$4 sm:$0xff]  }
  0xdc   : > { %v565_v14 = vsel %vm564_vm14, %v2101_v10, %v2091_v28  ;;  %v567_v16 = vsel %vm564_vm14, %v2102_v9, %v2096_v13  ;;  %v500_v17 = vpop.permute.xlu0 %499  ;;  %v531_v19 = vsel %vm524_vm15, %v512_v60, %v530_v12  ;;  %v2148_v7 = vld [vmem:[%s2604_s1 + $0x48] ss:$12 sps:$4 sm:$0xff]   ;;  %v2150_v9 = vld [vmem:[%s2604_s1 + $0x64] ss:$12 sps:$4 sm:$0xff]   ;;  %v2152_v12 = vld [vmem:[%s2604_s1 + $0x60] ss:$12 sps:$4 sm:$0xff]  }
  0xdd   : > { %v1951_v20 = vpack.c.bf16 %v567_v16, %v565_v14  ;;  %v502_v21 = vpop.permute.xlu1 %501  ;;  %v1777_v23 = vcombine.high %v529_v18, %v531_v19  ;;  %v515_v26 = vrot.slane %v500_v17, 4  ;;  %v1776_v34 = vcombine.low %v529_v18, %v531_v19  ;;  %v2149_v10 = vld [vmem:[%s2604_s1 + $0x38] ss:$12 sps:$4 sm:$0xff]   ;;  %v2154_v14 = vld [vmem:[%s2604_s1 + $0x7c] ss:$12 sps:$4 sm:$0xff]  }
  0xde   : > { %v516_v24 = vrot.slane %v502_v21, 4  ;;  %v2153_v16 = vld [vmem:[%s2604_s1 + $0x50] ss:$12 sps:$4 sm:$0xff]   ;;  %v2158_v18 = vld [vmem:[%s2604_s1 + $0x94] ss:$12 sps:$4 sm:$0xff]  }
  0xdf   : > { %1952 = vmatpush2.bf16.msk.msra.mxu0 %vm2340_vm9, %v1951_v20  ;;  %v2157_v19 = vld [vmem:[%s2604_s1 + $0x68] ss:$12 sps:$4 sm:$0xff]   ;;  %v2160_v20 = vld [vmem:[%s2604_s1 + $0x90] ss:$12 sps:$4 sm:$0xff]   ;;  %v2162_v21 = vld [vmem:[%s2604_s1 + $0xac] ss:$12 sps:$4 sm:$0xff]  }
  0xe0   : > { %1329 = vmatprep.subr.bf16.mxu0 %v1777_v23  ;;  %v504_v30 = vpop.permute.xlu0 %503  ;;  %v523_v35 = vsel %vm311_vm10, %v515_v26, %v516_v24  ;;  %v2161_v23 = vld [vmem:[%s2604_s1 + $0x80] ss:$12 sps:$4 sm:$0xff]   ;;  %v2164_v24 = vld [vmem:[%s2604_s1 + $0xa8] ss:$12 sps:$4 sm:$0xff]   ;;  %v2165_v26 = vld [vmem:[%s2604_s1 + $0x98] ss:$12 sps:$4 sm:$0xff]  }
  0xe1   : > { %v506_v32 = vpop.permute.xlu1 %505  ;;  %v517_v33 = vrot.slane %v504_v30, 4  ;;  %v525_v40 = vsel %vm524_vm15, %v500_v17, %v523_v35  ;;  %v2156_v17 = vld [vmem:[%s2604_s1 + $0x78] ss:$12 sps:$4 sm:$0xff]  }
  0xe2   : > { %v518_v37 = vrot.slane %v506_v32, 4 }
  0xe3   : > { %1330 = vmatpush2.bf16.msra.mxu0 %v1776_v34 }
  0xe4   : > { %v526_v39 = vsel %vm311_vm10, %v517_v33, %v518_v37  ;;  %v2105_v38 = vpop.permute.xlu0 %2104 }
  0xe5   : > { %v527_v41 = vsel %vm524_vm15, %v504_v30, %v526_v39  ;;  %v2110_v42 = vpop.permute.xlu1 %2109  ;;  %v2107_v43 = vunpack.i.h.bf16 %v2105_v38  ;;  %v2106_v44 = vunpack.i.l.bf16 %v2105_v38  ;;  %v2166_v30 = vld [vmem:[%s2604_s1 + $0xb0] ss:$12 sps:$4 sm:$0xff]  }
  0xe6   : > { %v1774_v45 = vcombine.low %v525_v40, %v527_v41  ;;  %v1775_v46 = vcombine.high %v525_v40, %v527_v41  ;;  %v2112_v47 = vunpack.i.h.bf16 %v2110_v42  ;;  %v2111_v0 = vunpack.i.l.bf16 %v2110_v42 }
  0xe7   : > { %v765_v5 = vsel %vm759_vm0, %v2106_v44, %v2107_v43 }
  0xe8   : > { %1331 = vmatprep.subr.bf16.mxu0 %v1775_v46  ;;  %v2115_v25 = vpop.permute.xlu0 %2114  ;;  %v767_v49 = vsel %vm759_vm0, %v2111_v0, %v2112_v47 }
  0xe9   : > { %v2120_v50 = vpop.permute.xlu1 %2119  ;;  %v2117_v51 = vunpack.i.h.bf16 %v2115_v25  ;;  %v2116_v2 = vunpack.i.l.bf16 %v2115_v25  ;;  %1332 = vmatpush2.bf16.msra.mxu0 %v1774_v45  ;;  %v1954_v4 = vpack.c.bf16 %v767_v49, %v765_v5 }
  0xea   : > { %v2122_v8 = vunpack.i.h.bf16 %v2120_v50  ;;  %v2121_v11 = vunpack.i.l.bf16 %v2120_v50 }
  0xeb   : > { %1955 = vmatprep.subr.msk.bf16.mxu1 %vm2332_vm7, %v1954_v4  ;;  %v764_v28 = vsel %vm759_vm0, %v2116_v2, %v2106_v44  ;;  %v766_v53 = vsel %vm759_vm0, %v2117_v51, %v2111_v0 }
  0xec   : > { %1334 = vmatmul.mubr.bf16.vlgmr.msra.gmra.mxu0 %v2135_v48  ;;  %v2125_v52 = vpop.permute.xlu0 %2124  ;;  %v1957_v56 = vpack.c.bf16 %v766_v53, %v764_v28  ;;  %v761_v29 = vsel %vm759_vm0, %v2121_v11, %v2122_v8 }
  0xed   : > { %v2130_v54 = vpop.permute.xlu1 %2129  ;;  %v2127_v55 = vunpack.i.h.bf16 %v2125_v52  ;;  %v2126_v57 = vunpack.i.l.bf16 %v2125_v52  ;;  %1343 = vmatprep.mubr.bf16.mxu0 %v2138_v27 }
  0xee   : > { %v2132_v13 = vunpack.i.h.bf16 %v2130_v54  ;;  %v2131_v15 = vunpack.i.l.bf16 %v2130_v54  ;;  %1958 = vmatpush1.bf16.msk.msra.mxu1 %vm2340_vm9, %v1957_v56 }
  0xef   : > { %v763_v58 = vsel %vm759_vm0, %v2126_v57, %v2127_v55 }
  0xf0   : > { %v760_v59 = vsel %vm759_vm0, %v2131_v15, %v2121_v11  ;;  %v762_v60 = vsel %vm759_vm0, %v2132_v13, %v2126_v57  ;;  %v1960_v61 = vpack.c.bf16 %v763_v58, %v761_v29 }
  0xf1   : > { %v1963_v63 = vpack.c.bf16 %v762_v60, %v760_v59 }
  0xf2   : > { %1961 = vmatprep.subr.msk.bf16.mxu1 %vm2332_vm7, %v1960_v61 }
  0xf3   : > { %1964 = vmatpush1.bf16.msk.msra.mxu1 %vm2340_vm9, %v1963_v63 }
  0xf4   : > { %1344 = vmatmul.mubr.bf16.gmra.mxu0 %v2140_v62 }
  0xf5   : > { %1353 = vmatprep.mubr.bf16.mxu0 %v2142_v1 }
  0xf6   : > { %1794 = vmatmul.mubr.msk.bf16.vlgmr.msra.gmra.mxu1 %vm1276_vm1, %v2141_v3 }
  0xf7   : > { %1456 = vmatprep.mubr.bf16.mxu1 %v2183_v31 }
  0xfc   : > { %1354 = vmatmul.mubr.bf16.gmra.mxu0 %v2144_v6 }
  0xfd   : > { %1363 = vmatprep.mubr.bf16.mxu0 %v2146_v22 }
  0xfe   : > { %1795 = vmatmul.mubr.msk.bf16.gmra.mxu1 %vm1276_vm1, %v2145_v36 }
  0xff   : > { %1466 = vmatprep.mubr.bf16.mxu1 %v2183_v31 }
 0x104   : > { %1364 = vmatmul.mubr.bf16.gmra.mxu0 %v2148_v7 }
 0x105   : > { %1373 = vmatprep.mubr.bf16.mxu0 %v2150_v9 }
 0x106   : > { %1796 = vmatmul.mubr.msk.bf16.gmra.mxu1 %vm1276_vm1, %v2149_v10 }
 0x107   : > { %1476 = vmatprep.mubr.bf16.mxu1 %v2183_v31 }
 0x10c   : > { %1374 = vmatmul.mubr.bf16.gmra.mxu0 %v2152_v12 }
 0x10d   : > { %1383 = vmatprep.mubr.bf16.mxu0 %v2154_v14 }
 0x10e   : > { %1797 = vmatmul.mubr.msk.bf16.gmra.mxu1 %vm1276_vm1, %v2153_v16 }
 0x10f   : > { %1486 = vmatprep.mubr.bf16.mxu1 %v2183_v31 }
 0x114   : > { %1384 = vmatmul.mubr.bf16.gmra.mxu0 %v2156_v17  ;;  %v899_v37 = vpop.permute.xlu0 %898  ;;  %v904_v38 = vpop.permute.xlu1 %903 }
 0x115   : > { %1393 = vmatprep.mubr.bf16.mxu0 %v2158_v18 }
 0x116   : > { %1798 = vmatmul.mubr.msk.bf16.gmra.mxu1 %vm1276_vm1, %v2157_v19 }
 0x117   : > { %1496 = vmatprep.mubr.bf16.mxu1 %v2183_v31 }
 0x118   : > { %v909_v47 = vpop.permute.xlu1 %908  ;;  %v914_v53 = vpop.permute.xlu0 %913 }
 0x11c   : > { %1394 = vmatmul.mubr.bf16.gmra.mxu0 %v2160_v20  ;;  %v919_v60 = vpop.permute.xlu1 %918 }
 0x11d   : > { %1403 = vmatprep.mubr.bf16.mxu0 %v2162_v21 }
 0x11e   : > { %1799 = vmatmul.mubr.msk.bf16.gmra.mxu1 %vm1276_vm1, %v2161_v23 }
 0x11f   : > { %1506 = vmatprep.mubr.bf16.mxu1 %v2183_v31 }
 0x120   : > { %v924_v12 = vpop.permute.xlu0 %923  ;;  %v929_v21 = vpop.permute.xlu1 %928 }
 0x124   : > { %1404 = vmatmul.mubr.bf16.gmra.mxu0 %v2164_v24 }
 0x126   : > { %1800 = vmatmul.mubr.msk.bf16.gmra.mxu1 %vm1276_vm1, %v2165_v26 }
 0x127   : > { %1516 = vmatprep.mubr.bf16.mxu1 %v2183_v31 }
 0x12e   : > { %1801 = vmatmul.mubr.msk.bf16.gmra.mxu1 %vm1276_vm1, %v2166_v30 }
 0x1ac   : > { %v1335_v32 = vpop.f32.mrf.mxu0 }
 0x1ad   : > { %v1336_v40 = vadd.f32 %v1335_v32, %v899_v37 }
 0x1ae   : > { %v1337_v33 = vpop.f32.mrf.mxu0 }
 0x1af   : > { %v1338_v43 = vadd.f32 %v1337_v33, %v899_v37 }
 0x1b0   : > { %v1339_v34 = vpop.f32.mrf.mxu0 }
 0x1b1   : > { %v1340_v25 = vadd.f32 %v1339_v34, %v904_v38 }
 0x1b2   : > { %v1341_v35 = vpop.f32.mrf.mxu0 }
 0x1b3   : > { %v1342_v48 = vadd.f32 %v1341_v35, %v904_v38 }
 0x1b4   : > { %v1345_v39 = vpop.f32.mrf.mxu0 }
 0x1b5   : > { %v1346_v4 = vadd.f32 %v1345_v39, %v909_v47 }
 0x1b6   : > { %v1347_v41 = vpop.f32.mrf.mxu0  ;;  %v1448_v42 = vpop.f32.mrf.mxu1 }
 0x1b7   : > { %v1449_v45 = vadd.f32 %v1448_v42, %v1336_v40  ;;  %v1348_v28 = vadd.f32 %v1347_v41, %v909_v47  ;;  %v934_v41 = vpop.permute.xlu0 %933  ;;  %v939_v47 = vpop.permute.xlu1 %938 }
 0x1b8   : > { %v1349_v44 = vpop.f32.mrf.mxu0  ;;  %v1450_v31 = vpop.f32.mrf.mxu1 }
 0x1b9   : > { %v1451_v46 = vadd.f32 %v1450_v31, %v1338_v43  ;;  %v1350_v29 = vadd.f32 %v1349_v44, %v914_v53 }
 0x1ba   : > { %v1351_v0 = vpop.f32.mrf.mxu0  ;;  %v1452_v5 = vpop.f32.mrf.mxu1 }
 0x1bb   : > { %v1853_v49 = vpack.c.bf16 %v1451_v46, %v1449_v45  ;;  %v1453_v2 = vadd.f32 %v1452_v5, %v1340_v25  ;;  %v1352_v58 = vadd.f32 %v1351_v0, %v914_v53 }
 0x1bc   : > { %v1355_v50 = vpop.f32.mrf.mxu0  ;;  %v1454_v51 = vpop.f32.mrf.mxu1 }
 0x1bd   : > { %1623 = vst [vmem:[%s2582_s7] sm:$0xff] %v1853_v49  ;;  %v1455_v27 = vadd.f32 %v1454_v51, %v1342_v48  ;;  %v1356_v63 = vadd.f32 %v1355_v50, %v919_v60 }
 0x1be   : > { %v1357_v8 = vpop.f32.mrf.mxu0  ;;  %v1458_v11 = vpop.f32.mrf.mxu1 }
 0x1bf   : > { %v1854_v52 = vpack.c.bf16 %v1455_v27, %v1453_v2  ;;  %v1459_v55 = vadd.f32 %v1458_v11, %v1346_v4  ;;  %v1358_v36 = vadd.f32 %v1357_v8, %v919_v60 }
 0x1c0   : > { %v1359_v56 = vpop.f32.mrf.mxu0  ;;  %v1460_v54 = vpop.f32.mrf.mxu1 }
 0x1c1   : > { %1624 = vst [vmem:[%s2582_s7 + $0x8] sm:$0xff] %v1854_v52  ;;  %v1461_v57 = vadd.f32 %v1460_v54, %v1348_v28  ;;  %v1360_v19 = vadd.f32 %v1359_v56, %v924_v12  ;;  %v944_v28 = vpop.permute.xlu0 %943 }
 0x1c2   : > { %v1361_v13 = vpop.f32.mrf.mxu0  ;;  %v1462_v15 = vpop.f32.mrf.mxu1 }
 0x1c3   : > { %v1855_v59 = vpack.c.bf16 %v1461_v57, %v1459_v55  ;;  %v1463_v1 = vadd.f32 %v1462_v15, %v1350_v29  ;;  %v1362_v20 = vadd.f32 %v1361_v13, %v924_v12 }
 0x1c4   : > { %v1365_v61 = vpop.f32.mrf.mxu0  ;;  %v1464_v62 = vpop.f32.mrf.mxu1 }
 0x1c5   : > { %1625 = vst [vmem:[%s2582_s7 + $0x10] sm:$0xff] %v1855_v59  ;;  %v1465_v3 = vadd.f32 %v1464_v62, %v1352_v58  ;;  %v1366_v30 = vadd.f32 %v1365_v61, %v929_v21  ;;  %v949_v58 = vpop.permute.xlu1 %948 }
 0x1c6   : > { %v1367_v6 = vpop.f32.mrf.mxu0  ;;  %v1468_v22 = vpop.f32.mrf.mxu1 }
 0x1c7   : > { %v1856_v7 = vpack.c.bf16 %v1465_v3, %v1463_v1  ;;  %v1469_v14 = vadd.f32 %v1468_v22, %v1356_v63  ;;  %v1368_v37 = vadd.f32 %v1367_v6, %v929_v21 }
 0x1c8   : > { %v1369_v9 = vpop.f32.mrf.mxu0  ;;  %v1470_v10 = vpop.f32.mrf.mxu1 }
 0x1c9   : > { %1626 = vst [vmem:[%s2582_s7 + $0x18] sm:$0xff] %v1856_v7  ;;  %v1471_v16 = vadd.f32 %v1470_v10, %v1358_v36  ;;  %v1370_v45 = vadd.f32 %v1369_v9, %v934_v41  ;;  %v954_v36 = vpop.permute.xlu0 %953 }
 0x1ca   : > { %v1371_v17 = vpop.f32.mrf.mxu0  ;;  %v1472_v18 = vpop.f32.mrf.mxu1 }
 0x1cb   : > { %v1857_v23 = vpack.c.bf16 %v1471_v16, %v1469_v14  ;;  %v1473_v32 = vadd.f32 %v1472_v18, %v1360_v19  ;;  %v1372_v46 = vadd.f32 %v1371_v17, %v934_v41 }
 0x1cc   : > { %v1375_v24 = vpop.f32.mrf.mxu0  ;;  %v1474_v26 = vpop.f32.mrf.mxu1 }
 0x1cd   : > { %1627 = vst [vmem:[%s2582_s7 + $0x20] sm:$0xff] %v1857_v23  ;;  %v1475_v33 = vadd.f32 %v1474_v26, %v1362_v20  ;;  %v1376_v48 = vadd.f32 %v1375_v24, %v939_v47  ;;  %v959_v23 = vpop.permute.xlu1 %958 }
 0x1ce   : > { %v1377_v34 = vpop.f32.mrf.mxu0  ;;  %v1478_v35 = vpop.f32.mrf.mxu1 }
 0x1cf   : > { %v1858_v39 = vpack.c.bf16 %v1475_v33, %v1473_v32  ;;  %v1479_v42 = vadd.f32 %v1478_v35, %v1366_v30  ;;  %v1378_v4 = vadd.f32 %v1377_v34, %v939_v47 }
 0x1d0   : > { %v1379_v38 = vpop.f32.mrf.mxu0  ;;  %v1480_v40 = vpop.f32.mrf.mxu1 }
 0x1d1   : > { %1628 = vst [vmem:[%s2582_s7 + $0x28] sm:$0xff] %v1858_v39  ;;  %v1481_v43 = vadd.f32 %v1480_v40, %v1368_v37  ;;  %v1380_v55 = vadd.f32 %v1379_v38, %v944_v28  ;;  %v964_v39 = vpop.permute.xlu0 %963 }
 0x1d2   : > { %v1381_v44 = vpop.f32.mrf.mxu0  ;;  %v1482_v31 = vpop.f32.mrf.mxu1 }
 0x1d3   : > { %v1859_v0 = vpack.c.bf16 %v1481_v43, %v1479_v42  ;;  %v1483_v49 = vadd.f32 %v1482_v31, %v1370_v45  ;;  %v1382_v57 = vadd.f32 %v1381_v44, %v944_v28 }
 0x1d4   : > { %v1385_v5 = vpop.f32.mrf.mxu0  ;;  %v1484_v25 = vpop.f32.mrf.mxu1 }
 0x1d5   : > { %1629 = vst [vmem:[%s2582_s7 + $0x30] sm:$0xff] %v1859_v0  ;;  %v1485_v50 = vadd.f32 %v1484_v25, %v1372_v46  ;;  %v1386_v63 = vadd.f32 %v1385_v5, %v949_v58  ;;  %v969_v46 = vpop.permute.xlu1 %968 }
 0x1d6   : > { %v1387_v51 = vpop.f32.mrf.mxu0  ;;  %v1488_v2 = vpop.f32.mrf.mxu1 }
 0x1d7   : > { %v1860_v27 = vpack.c.bf16 %v1485_v50, %v1483_v49  ;;  %v1489_v53 = vadd.f32 %v1488_v2, %v1376_v48  ;;  %v1388_v1 = vadd.f32 %v1387_v51, %v949_v58  ;;  %v974_v2 = vpop.permute.xlu0 %973 }
 0x1d8   : > { %v1389_v8 = vpop.f32.mrf.mxu0  ;;  %v1490_v11 = vpop.f32.mrf.mxu1 }
 0x1d9   : > { %1630 = vst [vmem:[%s2582_s7 + $0x38] sm:$0xff] %v1860_v27  ;;  %v1491_v52 = vadd.f32 %v1490_v11, %v1378_v4  ;;  %v1390_v14 = vadd.f32 %v1389_v8, %v954_v36 }
 0x1da   : > { %v1391_v56 = vpop.f32.mrf.mxu0  ;;  %v1492_v54 = vpop.f32.mrf.mxu1 }
 0x1db   : > { %v1861_v13 = vpack.c.bf16 %v1491_v52, %v1489_v53  ;;  %v1493_v59 = vadd.f32 %v1492_v54, %v1380_v55  ;;  %v1392_v16 = vadd.f32 %v1391_v56, %v954_v36 }
 0x1dc   : > { %v1395_v15 = vpop.f32.mrf.mxu0  ;;  %v1494_v29 = vpop.f32.mrf.mxu1 }
 0x1dd   : > { %1631 = vst [vmem:[%s2582_s7 + $0x40] sm:$0xff] %v1861_v13  ;;  %v1495_v60 = vadd.f32 %v1494_v29, %v1382_v57  ;;  %v1396_v26 = vadd.f32 %v1395_v15, %v959_v23 }
 0x1de   : > { %v1397_v61 = vpop.f32.mrf.mxu0  ;;  %v1498_v62 = vpop.f32.mrf.mxu1 }
 0x1df   : > { %v1862_v3 = vpack.c.bf16 %v1495_v60, %v1493_v59  ;;  %v1499_v7 = vadd.f32 %v1498_v62, %v1386_v63  ;;  %v1398_v30 = vadd.f32 %v1397_v61, %v959_v23 }
 0x1e0   : > { %v1399_v6 = vpop.f32.mrf.mxu0  ;;  %v1500_v22 = vpop.f32.mrf.mxu1 }
 0x1e1   : > { %1632 = vst [vmem:[%s2582_s7 + $0x48] sm:$0xff] %v1862_v3  ;;  %v1501_v9 = vadd.f32 %v1500_v22, %v1388_v1  ;;  %v1400_v40 = vadd.f32 %v1399_v6, %v964_v39 }
 0x1e2   : > { %v1401_v10 = vpop.f32.mrf.mxu0  ;;  %v1502_v12 = vpop.f32.mrf.mxu1 }
 0x1e3   : > { %v1863_v17 = vpack.c.bf16 %v1501_v9, %v1499_v7  ;;  %v1503_v20 = vadd.f32 %v1502_v12, %v1390_v14  ;;  %v1402_v41 = vadd.f32 %v1401_v10, %v964_v39 }
 0x1e4   : > { %v1405_v18 = vpop.f32.mrf.mxu0  ;;  %v1504_v19 = vpop.f32.mrf.mxu1 }
 0x1e5   : > { %1633 = vst [vmem:[%s2582_s7 + $0x50] sm:$0xff] %v1863_v17  ;;  %v1505_v21 = vadd.f32 %v1504_v19, %v1392_v16  ;;  %v1406_v0 = vadd.f32 %v1405_v18, %v969_v46 }
 0x1e6   : > { %v1508_v24 = vpop.f32.mrf.mxu1  ;;  %v1407_v33 = vpop.f32.mrf.mxu0 }
 0x1e7   : > { %v1864_v32 = vpack.c.bf16 %v1505_v21, %v1503_v20  ;;  %v1509_v35 = vadd.f32 %v1508_v24, %v1396_v26  ;;  %v1408_v5 = vadd.f32 %v1407_v33, %v969_v46 }
 0x1e8   : > { %v1510_v34 = vpop.f32.mrf.mxu1  ;;  %v1409_v43 = vpop.f32.mrf.mxu0 }
 0x1e9   : > { %1634 = vst [vmem:[%s2582_s7 + $0x58] sm:$0xff] %v1864_v32  ;;  %v1511_v37 = vadd.f32 %v1510_v34, %v1398_v30  ;;  %v1410_v27 = vadd.f32 %v1409_v43, %v974_v2 }
 0x1ea   : > { %v1512_v38 = vpop.f32.mrf.mxu1  ;;  %v1411_v48 = vpop.f32.mrf.mxu0 }
 0x1eb   : > { %v1865_v42 = vpack.c.bf16 %v1511_v37, %v1509_v35  ;;  %v1513_v31 = vadd.f32 %v1512_v38, %v1400_v40  ;;  %v1412_v8 = vadd.f32 %v1411_v48, %v974_v2 }
 0x1ec   : > { %v1514_v44 = vpop.f32.mrf.mxu1 }
 0x1ed   : > { %1635 = vst [vmem:[%s2582_s7 + $0x60] sm:$0xff] %v1865_v42  ;;  %v1515_v45 = vadd.f32 %v1514_v44, %v1402_v41 }
 0x1ee   : > { %v1518_v47 = vpop.f32.mrf.mxu1 }
 0x1ef   : > { %v1866_v25 = vpack.c.bf16 %v1515_v45, %v1513_v31  ;;  %v1519_v50 = vadd.f32 %v1518_v47, %v1406_v0 }
 0x1f0   : > { %v1520_v49 = vpop.f32.mrf.mxu1 }
 0x1f1   : > { %1636 = vst [vmem:[%s2582_s7 + $0x68] sm:$0xff] %v1866_v25  ;;  %v1521_v51 = vadd.f32 %v1520_v49, %v1408_v5 }
 0x1f2   : > { %v1522_v4 = vpop.f32.mrf.mxu1 }
 0x1f3   : > { %v1867_v11 = vpack.c.bf16 %v1521_v51, %v1519_v50  ;;  %v1523_v53 = vadd.f32 %v1522_v4, %v1410_v27 }
 0x1f4   : > { %v1524_v28 = vpop.f32.mrf.mxu1 }
 0x1f5   : > { %1637 = vst [vmem:[%s2582_s7 + $0x70] sm:$0xff] %v1867_v11  ;;  %v1525_v52 = vadd.f32 %v1524_v28, %v1412_v8 }
 0x1f7   : > { %v1868_v56 = vpack.c.bf16 %v1525_v52, %v1523_v53 }
 0x1f9   : > { %1638 = vst [vmem:[%s2582_s7 + $0x78] sm:$0xff] %v1868_v56 }
 0x1fa PF: > { %s13_s12 = sadd.s32 1, %s2173_s12  }
 0x1fb   : > { %p10_p4 = scmp.ge.s32.totalorder %s13_s12, 4  }
 0x1fd   :  { %12 = sbr.rel (!%p10_p4) target bundleno = 1 (0x1), region = 62 }

</bundles_post_ra>
